<compile_context>
chip_gen: v7x
topology: tpu7x:2x2x1
jax: 0.10.0
libtpu: 0.0.40
codegen_flags: <defaults>
</compile_context>

<pallas_src>
import functools

import jax
import jax.numpy as jnp
from jax.experimental import pallas as pl
from jax.experimental.pallas import tpu as pltpu


def _dwconv_bn_relu_kernel(x_ref, w_ref, b_ref, o_ref, xp_ref,
                           *, H, W, K, Cin, Cout):
    """One batch element per grid step.

    x_ref:  (1, Cin, H, W)      bf16 input (NCHW)
    w_ref:  (K*K, Cout, Cin)    f32, BN-scale folded, grouped structure expanded
    b_ref:  (Cout, 1)           f32 folded BN bias
    o_ref:  (1, Cout, H*W)      f32 output (NCHW with flattened spatial = lanes)
    xp_ref: (Cin, H+K-1, W+K-1) f32 VMEM scratch holding the zero-padded input
    """
    pad = K // 2

    # In-VMEM "same" padding: zero the halo scratch, place the input interior.
    # (Zeroed every step so it is correct under megacore grid sharding.)
    xp_ref[...] = jnp.zeros_like(xp_ref)
    xp_ref[:, pad:pad + H, pad:pad + W] = x_ref[0].astype(jnp.float32)

    # Register accumulator, lane axis = H*W (dense vregs, unmasked stores).
    acc = jnp.zeros((Cout, H * W), dtype=jnp.float32)
    for kh in range(K):
        for kw in range(K):
            x_win = xp_ref[:, kh:kh + H, kw:kw + W]        # (Cin, H, W)
            x_mat = x_win.reshape(Cin, H * W)              # (Cin, H*W)
            acc = acc + jnp.dot(w_ref[kh * K + kw], x_mat,
                                preferred_element_type=jnp.float32)

    # Folded BN bias + ReLU, single dense store.
    y = jnp.maximum(acc + b_ref[...], 0.0)
    o_ref[0] = y.astype(o_ref.dtype)


def dwconv_bn_relu(x_nchw, weight, gamma, beta, run_mean, run_var,
                   *, stride=1, eps=1e-5):
    """x_nchw: (N, Cin, H, W); weight: (Cout, 1, K, K) (PyTorch grouped layout,
    groups = Cin = dw_channels, so Cout must be a multiple of Cin)."""
    N, Cin, H, W = x_nchw.shape
    Cout = weight.shape[0]
    K = weight.shape[-1]
    if stride != 1:
        # TODO(synk): stride > 1 variant of _DWConv not implemented in this kernel.
        raise NotImplementedError("stride != 1 is not implemented")
    assert weight.shape[1] == 1 and Cout % Cin == 0, "expects groups == dw_channels"
    pad = K // 2
    m = Cout // Cin
    Hp, Wp = H + 2 * pad, W + 2 * pad
    HW = H * W

    # Fold BN (inference) into per-channel scale/bias; fold scale into weights.
    scale = (gamma / jnp.sqrt(run_var + eps)).astype(jnp.float32)          # (Cout,)
    bias = (beta - run_mean * scale).astype(jnp.float32).reshape(Cout, 1)  # (Cout,1)

    # Expand grouped (depthwise) weights into dense per-tap (Cout, Cin) matrices:
    # wexp[t, c, g] = scale[c] * w[c, 0, kh, kw] if g == c // m else 0.
    wf = (weight[:, 0, :, :].astype(jnp.float32) * scale[:, None, None])   # (Cout,K,K)
    w_taps = jnp.transpose(wf, (1, 2, 0)).reshape(K * K, Cout)             # (KK,Cout)
    onehot = jax.nn.one_hot(jnp.arange(Cout) // m, Cin, dtype=jnp.float32) # (Cout,Cin)
    wexp = w_taps[:, :, None] * onehot[None, :, :]                         # (KK,Cout,Cin)
    # TODO(synk): for large depthwise channel counts this dense expansion wastes
    #             O(Cin) MXU work; a per-channel VPU MAC formulation would scale better.

    # bf16 transport for the activations (halves HBM traffic); math stays f32.
    x_bf16 = x_nchw.astype(jnp.bfloat16)

    kernel = functools.partial(_dwconv_bn_relu_kernel,
                               H=H, W=W, K=K, Cin=Cin, Cout=Cout)

    flops = 2 * N * Cout * H * W * K * K
    bytes_accessed = (x_bf16.size * 2 + wexp.size * 4 + bias.size * 4
                      + N * Cout * HW * 4)

    out_flat = pl.pallas_call(
        kernel,
        out_shape=jax.ShapeDtypeStruct((N, Cout, HW), jnp.float32),
        grid_spec=pltpu.PrefetchScalarGridSpec(
            num_scalar_prefetch=0,
            grid=(N,),
            in_specs=[
                pl.BlockSpec((1, Cin, H, W), lambda b: (b, 0, 0, 0)),
                pl.BlockSpec((K * K, Cout, Cin), lambda b: (0, 0, 0)),
                pl.BlockSpec((Cout, 1), lambda b: (0, 0)),
            ],
            out_specs=pl.BlockSpec((1, Cout, HW), lambda b: (b, 0, 0)),
            scratch_shapes=[pltpu.VMEM((Cin, Hp, Wp), jnp.float32)],
        ),
        compiler_params=pltpu.CompilerParams(
            dimension_semantics=("parallel",)),
        cost_estimate=pl.CostEstimate(flops=flops, transcendentals=0,
                                      bytes_accessed=bytes_accessed),
    )(x_bf16, wexp, bias)

    # (N, Cout, H*W) -> (N, Cout, H, W): same memory layout, free reshape
    # (no transpose pass over HBM).
    # TODO(synk): for large H on v7x (64 MiB VMEM, 2 TCs) add an H-strip grid axis
    #             with a K-1 halo; unnecessary at these shapes.
    return out_flat.reshape(N, Cout, H, W)


def _reference(x, weight, gamma, beta, run_mean, run_var, *, eps=1e-5):
    """Pure-JAX reference (grouped lax conv, f32) for correctness checking."""
    Cin = x.shape[1]
    pad = weight.shape[-1] // 2
    y = jax.lax.conv_general_dilated(
        x.astype(jnp.float32), weight.astype(jnp.float32),
        window_strides=(1, 1), padding=[(pad, pad), (pad, pad)],
        dimension_numbers=("NCHW", "OIHW", "NCHW"),
        feature_group_count=Cin)
    scale = (gamma / jnp.sqrt(run_var + eps)).reshape(1, -1, 1, 1)
    bias = (beta - run_mean * gamma / jnp.sqrt(run_var + eps)).reshape(1, -1, 1, 1)
    return jnp.maximum(y * scale + bias, 0.0)


if __name__ == "__main__":
    key = jax.random.PRNGKey(0)
    k_x, k_w, k_g, k_b, k_m, k_v = jax.random.split(key, 6)

    # _DWConv(dw_channels=4, out_channels=8, stride=1): groups=4, weight (8,1,3,3).
    N, Cin, H, W = 2, 4, 16, 16
    Cout, K = 8, 3

    x = jax.random.normal(k_x, (N, Cin, H, W), dtype=jnp.float32)
    weight = jax.random.normal(k_w, (Cout, 1, K, K), dtype=jnp.float32) * 0.1
    gamma = jax.random.normal(k_g, (Cout,), dtype=jnp.float32) * 0.1 + 1.0
    beta = jax.random.normal(k_b, (Cout,), dtype=jnp.float32) * 0.1
    run_mean = jax.random.normal(k_m, (Cout,), dtype=jnp.float32) * 0.1
    run_var = jax.random.uniform(k_v, (Cout,), dtype=jnp.float32,
                                 minval=0.5, maxval=1.5)

    out = dwconv_bn_relu(x, weight, gamma, beta, run_mean, run_var)
    out = jax.block_until_ready(out)

    ref = _reference(x, weight, gamma, beta, run_mean, run_var)
    assert out.shape == (N, Cout, H, W), out.shape
    max_err = float(jnp.max(jnp.abs(out - ref)))
    # bf16 activation transport -> slightly relaxed tolerance vs pure-f32 reference.
    assert jnp.allclose(out, ref, atol=2e-2, rtol=2e-2), max_err

    print("KERNEL_OK")
</pallas_src>

<mosaic_0001>
module attributes {stable_mosaic.version = 11 : i64} {
  func.func @_dwconv_bn_relu_kernel(%arg0: i32, %arg1: memref<1x4x16x16xbf16, #tpu.memory_space<vmem>>, %arg2: memref<9x8x4xf32, #tpu.memory_space<vmem>>, %arg3: memref<8x1xf32, #tpu.memory_space<vmem>>, %arg4: memref<1x8x256xf32, #tpu.memory_space<vmem>>, %arg5: memref<4x18x18xf32, #tpu.memory_space<vmem>>) attributes {dimension_semantics = [#tpu.dimension_semantics<parallel>], iteration_bounds = array<i64: 2>, scalar_prefetch = 0 : i64, scratch_operands = 1 : i64, tpu.core_type = #tpu.core_type<tc>, window_params = [{transform_indices = @transform_0, window_bounds = array<i64: 1, 4, 16, 16>}, {pipeline_mode = #tpu.pipeline_mode<synchronous>, transform_indices = @transform_1, window_bounds = array<i64: 9, 8, 4>}, {pipeline_mode = #tpu.pipeline_mode<synchronous>, transform_indices = @transform_2, window_bounds = array<i64: 8, 1>}, {transform_indices = @transform_3, window_bounds = array<i64: 1, 8, 256>}]} {
    %cst = arith.constant 0.000000e+00 : f32
    %0 = vector.broadcast %cst : f32 to vector<4x18x18xf32>
    %c0 = arith.constant 0 : index
    %c0_0 = arith.constant 0 : index
    %c0_1 = arith.constant 0 : index
    %1 = vector.load %arg5[%c0, %c0_0, %c0_1] : memref<4x18x18xf32, #tpu.memory_space<vmem>>, vector<4x18x18xf32>
    tpu.vector_store %arg5[%c0, %c0_0, %c0_1], %0 {strides = array<i32>} : memref<4x18x18xf32, #tpu.memory_space<vmem>>, vector<4x18x18xf32>,
    %c0_2 = arith.constant 0 : index
    %c0_3 = arith.constant 0 : index
    %c0_4 = arith.constant 0 : index
    %c0_5 = arith.constant 0 : index
    %2 = vector.load %arg1[%c0_2, %c0_3, %c0_4, %c0_5] : memref<1x4x16x16xbf16, #tpu.memory_space<vmem>>, vector<1x4x16x16xbf16>
    %3 = vector.shape_cast %2 : vector<1x4x16x16xbf16> to vector<4x16x16xbf16>
    %4 = arith.extf %3 : vector<4x16x16xbf16> to vector<4x16x16xf32>
    %c0_6 = arith.constant 0 : index
    %c1 = arith.constant 1 : index
    %c1_7 = arith.constant 1 : index
    %5 = vector.load %arg5[%c0_6, %c1, %c1_7] : memref<4x18x18xf32, #tpu.memory_space<vmem>>, vector<4x16x16xf32>
    tpu.vector_store %arg5[%c0_6, %c1, %c1_7], %4 {strides = array<i32>} : memref<4x18x18xf32, #tpu.memory_space<vmem>>, vector<4x16x16xf32>,
    %cst_8 = arith.constant 0.000000e+00 : f32
    %6 = vector.broadcast %cst_8 : f32 to vector<8x256xf32>
    %c0_9 = arith.constant 0 : index
    %c0_10 = arith.constant 0 : index
    %c0_11 = arith.constant 0 : index
    %7 = vector.load %arg5[%c0_9, %c0_10, %c0_11] : memref<4x18x18xf32, #tpu.memory_space<vmem>>, vector<4x16x16xf32>
    %8 = vector.shape_cast %7 : vector<4x16x16xf32> to vector<4x256xf32>
    %c0_12 = arith.constant 0 : index
    %c0_13 = arith.constant 0 : index
    %c0_14 = arith.constant 0 : index
    %9 = vector.load %arg2[%c0_12, %c0_13, %c0_14] : memref<9x8x4xf32, #tpu.memory_space<vmem>>, vector<1x8x4xf32>
    %10 = vector.shape_cast %9 : vector<1x8x4xf32> to vector<8x4xf32>
    %cst_15 = arith.constant dense<0.000000e+00> : vector<8x256xf32>
    %11 = tpu.matmul %10, %8, %cst_15 {dimension_numbers = #tpu.dot_dimension_numbers<[1], [0], [0], [1], [0, 0, 1, 1], [], []>} : vector<8x4xf32>, vector<4x256xf32>, vector<8x256xf32> -> vector<8x256xf32>
    %12 = arith.addf %6, %11 : vector<8x256xf32>
    %c0_16 = arith.constant 0 : index
    %c0_17 = arith.constant 0 : index
    %c1_18 = arith.constant 1 : index
    %13 = vector.load %arg5[%c0_16, %c0_17, %c1_18] : memref<4x18x18xf32, #tpu.memory_space<vmem>>, vector<4x16x16xf32>
    %14 = vector.shape_cast %13 : vector<4x16x16xf32> to vector<4x256xf32>
    %c1_19 = arith.constant 1 : index
    %c0_20 = arith.constant 0 : index
    %c0_21 = arith.constant 0 : index
    %15 = vector.load %arg2[%c1_19, %c0_20, %c0_21] : memref<9x8x4xf32, #tpu.memory_space<vmem>>, vector<1x8x4xf32>
    %16 = vector.shape_cast %15 : vector<1x8x4xf32> to vector<8x4xf32>
    %cst_22 = arith.constant dense<0.000000e+00> : vector<8x256xf32>
    %17 = tpu.matmul %16, %14, %cst_22 {dimension_numbers = #tpu.dot_dimension_numbers<[1], [0], [0], [1], [0, 0, 1, 1], [], []>} : vector<8x4xf32>, vector<4x256xf32>, vector<8x256xf32> -> vector<8x256xf32>
    %18 = arith.addf %12, %17 : vector<8x256xf32>
    %c0_23 = arith.constant 0 : index
    %c0_24 = arith.constant 0 : index
    %c2 = arith.constant 2 : index
    %19 = vector.load %arg5[%c0_23, %c0_24, %c2] : memref<4x18x18xf32, #tpu.memory_space<vmem>>, vector<4x16x16xf32>
    %20 = vector.shape_cast %19 : vector<4x16x16xf32> to vector<4x256xf32>
    %c2_25 = arith.constant 2 : index
    %c0_26 = arith.constant 0 : index
    %c0_27 = arith.constant 0 : index
    %21 = vector.load %arg2[%c2_25, %c0_26, %c0_27] : memref<9x8x4xf32, #tpu.memory_space<vmem>>, vector<1x8x4xf32>
    %22 = vector.shape_cast %21 : vector<1x8x4xf32> to vector<8x4xf32>
    %cst_28 = arith.constant dense<0.000000e+00> : vector<8x256xf32>
    %23 = tpu.matmul %22, %20, %cst_28 {dimension_numbers = #tpu.dot_dimension_numbers<[1], [0], [0], [1], [0, 0, 1, 1], [], []>} : vector<8x4xf32>, vector<4x256xf32>, vector<8x256xf32> -> vector<8x256xf32>
    %24 = arith.addf %18, %23 : vector<8x256xf32>
    %c0_29 = arith.constant 0 : index
    %c1_30 = arith.constant 1 : index
    %c0_31 = arith.constant 0 : index
    %25 = vector.load %arg5[%c0_29, %c1_30, %c0_31] : memref<4x18x18xf32, #tpu.memory_space<vmem>>, vector<4x16x16xf32>
    %26 = vector.shape_cast %25 : vector<4x16x16xf32> to vector<4x256xf32>
    %c3 = arith.constant 3 : index
    %c0_32 = arith.constant 0 : index
    %c0_33 = arith.constant 0 : index
    %27 = vector.load %arg2[%c3, %c0_32, %c0_33] : memref<9x8x4xf32, #tpu.memory_space<vmem>>, vector<1x8x4xf32>
    %28 = vector.shape_cast %27 : vector<1x8x4xf32> to vector<8x4xf32>
    %cst_34 = arith.constant dense<0.000000e+00> : vector<8x256xf32>
    %29 = tpu.matmul %28, %26, %cst_34 {dimension_numbers = #tpu.dot_dimension_numbers<[1], [0], [0], [1], [0, 0, 1, 1], [], []>} : vector<8x4xf32>, vector<4x256xf32>, vector<8x256xf32> -> vector<8x256xf32>
    %30 = arith.addf %24, %29 : vector<8x256xf32>
    %c0_35 = arith.constant 0 : index
    %c1_36 = arith.constant 1 : index
    %c1_37 = arith.constant 1 : index
    %31 = vector.load %arg5[%c0_35, %c1_36, %c1_37] : memref<4x18x18xf32, #tpu.memory_space<vmem>>, vector<4x16x16xf32>
    %32 = vector.shape_cast %31 : vector<4x16x16xf32> to vector<4x256xf32>
    %c4 = arith.constant 4 : index
    %c0_38 = arith.constant 0 : index
    %c0_39 = arith.constant 0 : index
    %33 = vector.load %arg2[%c4, %c0_38, %c0_39] : memref<9x8x4xf32, #tpu.memory_space<vmem>>, vector<1x8x4xf32>
    %34 = vector.shape_cast %33 : vector<1x8x4xf32> to vector<8x4xf32>
    %cst_40 = arith.constant dense<0.000000e+00> : vector<8x256xf32>
    %35 = tpu.matmul %34, %32, %cst_40 {dimension_numbers = #tpu.dot_dimension_numbers<[1], [0], [0], [1], [0, 0, 1, 1], [], []>} : vector<8x4xf32>, vector<4x256xf32>, vector<8x256xf32> -> vector<8x256xf32>
    %36 = arith.addf %30, %35 : vector<8x256xf32>
    %c0_41 = arith.constant 0 : index
    %c1_42 = arith.constant 1 : index
    %c2_43 = arith.constant 2 : index
    %37 = vector.load %arg5[%c0_41, %c1_42, %c2_43] : memref<4x18x18xf32, #tpu.memory_space<vmem>>, vector<4x16x16xf32>
    %38 = vector.shape_cast %37 : vector<4x16x16xf32> to vector<4x256xf32>
    %c5 = arith.constant 5 : index
    %c0_44 = arith.constant 0 : index
    %c0_45 = arith.constant 0 : index
    %39 = vector.load %arg2[%c5, %c0_44, %c0_45] : memref<9x8x4xf32, #tpu.memory_space<vmem>>, vector<1x8x4xf32>
    %40 = vector.shape_cast %39 : vector<1x8x4xf32> to vector<8x4xf32>
    %cst_46 = arith.constant dense<0.000000e+00> : vector<8x256xf32>
    %41 = tpu.matmul %40, %38, %cst_46 {dimension_numbers = #tpu.dot_dimension_numbers<[1], [0], [0], [1], [0, 0, 1, 1], [], []>} : vector<8x4xf32>, vector<4x256xf32>, vector<8x256xf32> -> vector<8x256xf32>
    %42 = arith.addf %36, %41 : vector<8x256xf32>
    %c0_47 = arith.constant 0 : index
    %c2_48 = arith.constant 2 : index
    %c0_49 = arith.constant 0 : index
    %43 = vector.load %arg5[%c0_47, %c2_48, %c0_49] : memref<4x18x18xf32, #tpu.memory_space<vmem>>, vector<4x16x16xf32>
    %44 = vector.shape_cast %43 : vector<4x16x16xf32> to vector<4x256xf32>
    %c6 = arith.constant 6 : index
    %c0_50 = arith.constant 0 : index
    %c0_51 = arith.constant 0 : index
    %45 = vector.load %arg2[%c6, %c0_50, %c0_51] : memref<9x8x4xf32, #tpu.memory_space<vmem>>, vector<1x8x4xf32>
    %46 = vector.shape_cast %45 : vector<1x8x4xf32> to vector<8x4xf32>
    %cst_52 = arith.constant dense<0.000000e+00> : vector<8x256xf32>
    %47 = tpu.matmul %46, %44, %cst_52 {dimension_numbers = #tpu.dot_dimension_numbers<[1], [0], [0], [1], [0, 0, 1, 1], [], []>} : vector<8x4xf32>, vector<4x256xf32>, vector<8x256xf32> -> vector<8x256xf32>
    %48 = arith.addf %42, %47 : vector<8x256xf32>
    %c0_53 = arith.constant 0 : index
    %c2_54 = arith.constant 2 : index
    %c1_55 = arith.constant 1 : index
    %49 = vector.load %arg5[%c0_53, %c2_54, %c1_55] : memref<4x18x18xf32, #tpu.memory_space<vmem>>, vector<4x16x16xf32>
    %50 = vector.shape_cast %49 : vector<4x16x16xf32> to vector<4x256xf32>
    %c7 = arith.constant 7 : index
    %c0_56 = arith.constant 0 : index
    %c0_57 = arith.constant 0 : index
    %51 = vector.load %arg2[%c7, %c0_56, %c0_57] : memref<9x8x4xf32, #tpu.memory_space<vmem>>, vector<1x8x4xf32>
    %52 = vector.shape_cast %51 : vector<1x8x4xf32> to vector<8x4xf32>
    %cst_58 = arith.constant dense<0.000000e+00> : vector<8x256xf32>
    %53 = tpu.matmul %52, %50, %cst_58 {dimension_numbers = #tpu.dot_dimension_numbers<[1], [0], [0], [1], [0, 0, 1, 1], [], []>} : vector<8x4xf32>, vector<4x256xf32>, vector<8x256xf32> -> vector<8x256xf32>
    %54 = arith.addf %48, %53 : vector<8x256xf32>
    %c0_59 = arith.constant 0 : index
    %c2_60 = arith.constant 2 : index
    %c2_61 = arith.constant 2 : index
    %55 = vector.load %arg5[%c0_59, %c2_60, %c2_61] : memref<4x18x18xf32, #tpu.memory_space<vmem>>, vector<4x16x16xf32>
    %56 = vector.shape_cast %55 : vector<4x16x16xf32> to vector<4x256xf32>
    %c8 = arith.constant 8 : index
    %c0_62 = arith.constant 0 : index
    %c0_63 = arith.constant 0 : index
    %57 = vector.load %arg2[%c8, %c0_62, %c0_63] : memref<9x8x4xf32, #tpu.memory_space<vmem>>, vector<1x8x4xf32>
    %58 = vector.shape_cast %57 : vector<1x8x4xf32> to vector<8x4xf32>
    %cst_64 = arith.constant dense<0.000000e+00> : vector<8x256xf32>
    %59 = tpu.matmul %58, %56, %cst_64 {dimension_numbers = #tpu.dot_dimension_numbers<[1], [0], [0], [1], [0, 0, 1, 1], [], []>} : vector<8x4xf32>, vector<4x256xf32>, vector<8x256xf32> -> vector<8x256xf32>
    %60 = arith.addf %54, %59 : vector<8x256xf32>
    %c0_65 = arith.constant 0 : index
    %c0_66 = arith.constant 0 : index
    %61 = vector.load %arg3[%c0_65, %c0_66] : memref<8x1xf32, #tpu.memory_space<vmem>>, vector<8x1xf32>
    %62 = vector.broadcast %61 : vector<8x1xf32> to vector<8x256xf32>
    %63 = arith.addf %60, %62 : vector<8x256xf32>
    %cst_67 = arith.constant 0.000000e+00 : f32
    %64 = vector.broadcast %cst_67 : f32 to vector<8x256xf32>
    %65 = arith.maximumf %63, %64 : vector<8x256xf32>
    %c0_68 = arith.constant 0 : index
    %c0_69 = arith.constant 0 : index
    %c0_70 = arith.constant 0 : index
    %66 = vector.load %arg4[%c0_68, %c0_69, %c0_70] : memref<1x8x256xf32, #tpu.memory_space<vmem>>, vector<1x8x256xf32>
    %67 = vector.shape_cast %66 : vector<1x8x256xf32> to vector<8x256xf32>
    %68 = vector.shape_cast %65 : vector<8x256xf32> to vector<1x8x256xf32>
    tpu.vector_store %arg4[%c0_68, %c0_69, %c0_70], %68 {strides = array<i32>} : memref<1x8x256xf32, #tpu.memory_space<vmem>>, vector<1x8x256xf32>,
    return
  }
  func.func @transform_0(%arg0: i32) -> (i32, i32, i32, i32) {
    %c0_i32 = arith.constant 0 : i32
    %c0_i32_0 = arith.constant 0 : i32
    %c0_i32_1 = arith.constant 0 : i32
    %c0_i32_2 = arith.constant 0 : i32
    return %arg0, %c0_i32, %c0_i32_0, %c0_i32_1 : i32, i32, i32, i32
  }
  func.func @transform_1(%arg0: i32) -> (i32, i32, i32) {
    %c0_i32 = arith.constant 0 : i32
    %c0_i32_0 = arith.constant 0 : i32
    %c0_i32_1 = arith.constant 0 : i32
    %c0_i32_2 = arith.constant 0 : i32
    return %c0_i32, %c0_i32_0, %c0_i32_1 : i32, i32, i32
  }
  func.func @transform_2(%arg0: i32) -> (i32, i32) {
    %c0_i32 = arith.constant 0 : i32
    %c0_i32_0 = arith.constant 0 : i32
    %c0_i32_1 = arith.constant 0 : i32
    return %c0_i32, %c0_i32_0 : i32, i32
  }
  func.func @transform_3(%arg0: i32) -> (i32, i32, i32) {
    %c0_i32 = arith.constant 0 : i32
    %c0_i32_0 = arith.constant 0 : i32
    %c0_i32_1 = arith.constant 0 : i32
    return %arg0, %c0_i32, %c0_i32_0 : i32, i32, i32
  }
}

</mosaic_0001>

<bundles_post_ra>
// kernel: tpu_custom_call.1
= control target key start
LH: loop header
LB: loop body
LE: loop exit
PB: predicated region body
PF: predicated region fallthrough
CT: control target
= control target key end

     0   :  { %8 = vsyncpa [#allocation4], 0  ;;  %s4814_s0 = inlined_call_operand.vmem [shape: bf16[2,4,16,16], index: 0, kind: input, shape index: {}]   ;;  %s4815_s1 = inlined_call_operand.vmem [shape: f32[9,8,4], index: 1, kind: input, shape index: {}]   ;;  %s4816_s2 = inlined_call_operand.vmem [shape: f32[8,1], index: 2, kind: input, shape index: {}]   ;;  %s4817_s3 = inlined_call_operand.hbm [shape: f32[2,8,256], index: 3, kind: output, shape index: {}]  }
   0x1   :  { %10 = vsyncpa [#allocation4 + $0x1], 0  ;;  %s3481_s12 = smov 0   ;;  %s3483_s13 = smov 0  }
   0x2   :  { %s3485_s14 = smov 0   ;;  %s3487_s15 = smov 0  }
   0x3 LB: > { %s3502_s16 = sadd.s32 4294967295, %s3444_s15   ;;  %s3196_s17 = sadd.s32 4294967294, %s3444_s15   ;;  %s3444_s15 = sphi %s3487_s15, %s4902_s15   ;;  %s3440_s14 = sphi %s3485_s14, %s4901_s14   ;;  %s3436_s13 = sphi %s3483_s13, %s4900_s13   ;;  %s3432_s12 = sphi %s3481_s12, %s4899_s12  }
   0x4   : > { %s3506_s18 = sadd.s32 1, %s3444_s15   ;;  %s91_s19 = sadd.s32 1, %s3440_s14 }
   0x5   : > { %s88_s20 = ssub.s32 %s3444_s15, %s3506_s18  ;;  %p101_p0 = scmp.ne.s32.totalorder %s3440_s14, %s3436_s13 }
   0x6   : > { %p89_p1 = scmp.eq.s32.totalorder %s88_s20, 0  ;;  %p102_p2 = scmp.eq.s32.totalorder %s3502_s16, 1 }
   0x7   : > { %p107_p3 = scmp.ne.s32.totalorder %s3436_s13, %s3432_s12  ;;  %p108_p4 = scmp.eq.s32.totalorder %s3196_s17, 1 }
   0x8   : > { %s3517_s21 = scalar_select %p89_p1, %s3440_s14, %s91_s19  }
   0x9   : > { %p3519_p5 = por %p102_p2, %p101_p0  ;;  %p3523_p6 = por %p108_p4, %p107_p3 }
   0xa   : > { %p3199_p7 = scmp.ge.s32.totalorder %s3444_s15, 1  ;;  %p140_p8 = scmp.lt.s32.totalorder %s3444_s15, 3 }
   0xc   : > { %p141_p9 = pnand %p3199_p7, %p140_p8 }
   0xe   : > { %144 = sbr.rel (%p141_p9) target bundleno = 854 (0x356), region = 32 }
  0x15   : > { %p164_p10 = scmp.lt.s32.totalorder %s3502_s16, 1  ;;  %vm169_vm0 = vcmask 146432   ;;  %vm172_vm1 = vcmask 140288   ;;  %v4831_v0 = vmov 0.0   ;;  %s3447_s29 = smov 1   ;;  %vm231_vm2 = vcmask 138248  }
  0x16   : > { %171 = vst.msk [vmem:[#allocation2 + $0x8] sm:$0xff] %vm169_vm0, %v4831_v0  ;;  %175 = vst.msk [vmem:[#allocation2 + $0x20] sm:$0xff] %vm169_vm0, %v4831_v0  ;;  %1813 = vmatprep.mubr.f32.mxu0 %v4831_v0  ;;  %777 = vmatprep.mubr.f32.mxu1 %v4831_v0  ;;  %v3448_v29 = vmov 1983009808   ;;  %v253_v31 = vlaneseq  ;;  %s3449_s30 = smov 127   ;;  %s3450_s4 = smov 126  }
  0x17   : > { %173 = vst.msk [vmem:[#allocation2 + $0x10] sm:$0x3] %vm172_vm1, %v4831_v0  ;;  %176 = vst.msk [vmem:[#allocation2 + $0x28] sm:$0x3] %vm172_vm1, %v4831_v0  ;;  %s165_s24 = scalar_select %p164_p10, %s3502_s16, 1  ;;  %v251_v30 = vunpack.c.l.s4 %v3448_v29  ;;  %vm440_vm3 = vcmask 130048  }
  0x18   : > { %170 = vst.msk [vmem:[#allocation2] sm:$0xff] %vm169_vm0, %v4831_v0  ;;  %174 = vst.msk [vmem:[#allocation2 + $0x18] sm:$0xff] %vm169_vm0, %v4831_v0  ;;  %v3558_v35 = vshrl.u32 %v253_v31, 7  ;;  %s3452_s5 = smov 32   ;;  %s3453_s6 = smov 64   ;;  %vm442_vm4 = vcmask 261120  }
  0x19   : > { %177 = vst.msk [vmem:[#allocation2 + $0x30] sm:$0xff] %vm169_vm0, %v4831_v0  ;;  %178 = vst.msk [vmem:[#allocation2 + $0x38] sm:$0xff] %vm169_vm0, %v4831_v0  ;;  %s3243_s25 = sshll.u32 %s165_s24, 5  ;;  %v252_v34 = vunpack.c.0.s8 %v251_v30  ;;  %s3454_s7 = smov 96   ;;  %vm444_vm5 = vcmask 392192   ;;  %vm446_vm6 = vcmask 523264  }
  0x1a   : > { %179 = vst.msk [vmem:[#allocation2 + $0x40] sm:$0x3] %vm172_vm1, %v4831_v0  ;;  %182 = vst.msk [vmem:[#allocation2 + $0x58] sm:$0x3] %vm172_vm1, %v4831_v0  ;;  %s168_s28 = scalar_lea.vmem %s4814_s0, %s3243_s25  ;;  %s3455_s8 = smov 16   ;;  %vm448_vm7 = vcmask 654336  }
  0x1b   : > { %180 = vst.msk [vmem:[#allocation2 + $0x48] sm:$0xff] %vm169_vm0, %v4831_v0  ;;  %181 = vst.msk [vmem:[#allocation2 + $0x50] sm:$0xff] %vm169_vm0, %v4831_v0  ;;  %v3246_v1 = vld [vmem:[%s168_s28] sm:$0xff]   ;;  %v3261_v2 = vld [vmem:[%s168_s28 + $0x8] sm:$0xff]   ;;  %v3565_v41 = vsub.s32 %v252_v34, %v3558_v35  ;;  %s3456_s9 = smov 48   ;;  %s3457_s10 = smov 80  }
  0x1c   : > { %v3262_v3 = vld [vmem:[%s168_s28 + $0x10] sm:$0xff]   ;;  %v3248_v4 = vunpack.c.h.bf16 %v3246_v1  ;;  %v3252_v5 = vunpack.c.h.bf16 %v3261_v2  ;;  %v3247_v6 = vunpack.c.l.bf16 %v3246_v1  ;;  %v3251_v7 = vunpack.c.l.bf16 %v3261_v2  ;;  %v3263_v8 = vld [vmem:[%s168_s28 + $0x18] sm:$0xff]   ;;  %s3458_s11 = smov 112   ;;  %s161_s20 = sand.u32 1, %s3436_s13  }
  0x1d   : > { %v3256_v9 = vunpack.c.h.bf16 %v3262_v3  ;;  %v3260_v10 = vunpack.c.h.bf16 %v3263_v8  ;;  %v3255_v11 = vunpack.c.l.bf16 %v3262_v3  ;;  %v3259_v12 = vunpack.c.l.bf16 %v3263_v8  ;;  %s3200_s24 = sshll.u32 %s161_s20, 4  ;;  %s3244_s25 = sshll.u32 %s3502_s16, 8 }
  0x1e   : > { %v3333_v13 = vpack.i.bf16 %v3252_v5, %v3248_v4  ;;  %v3343_v14 = vpack.i.bf16 %v3251_v7, %v3247_v6  ;;  %vm450_vm8 = vcmask 785408   ;;  %vm706_vm9 = vcmask 1043456   ;;  %s163_s26 = scalar_lea.vmem [#allocation3], %s3200_s24  ;;  %s3460_s16 = smov [#allocation3]  }
  0x1f   : > { %v3338_v15 = vpack.i.bf16 %v3260_v10, %v3256_v9  ;;  %v3348_v16 = vpack.i.bf16 %v3259_v12, %v3255_v11  ;;  %vm452_vm10 = vcmask 916480   ;;  %vm702_vm11 = vcmask 31744   ;;  %s3137_s27 = sshll.u32 %s163_s26, 4  ;;  %s4774_s27 = int_to_ptr.vmem [resolvable:$true] %s3137_s27 }
  0x20   : > { %3334 = vrot.lane.b32.xlu0 %v3333_v13, %s3447_s29  ;;  %3344 = vrot.lane.b32.xlu1 %v3343_v14, %s3447_s29  ;;  %v3451_v14 = vmov 1934713408  }
  0x24   : > { %3339 = vrot.lane.b32.xlu0 %v3338_v15, %s3447_s29  ;;  %3349 = vrot.lane.b32.xlu1 %v3348_v16, %s3447_s29  ;;  %v283_v15 = vunpack.c.l.s4 %v3451_v14 }
  0x92   : > { %v3335_v17 = vpop.permute.xlu0 %3334  ;;  %v3345_v18 = vpop.permute.xlu1 %3344 }
  0x93   : > { %v3337_v19 = vunpack.i.h.bf16 %v3335_v17  ;;  %v3336_v20 = vunpack.i.l.bf16 %v3335_v17  ;;  %v3347_v21 = vunpack.i.h.bf16 %v3345_v18  ;;  %v3346_v22 = vunpack.i.l.bf16 %v3345_v18 }
  0x94   : > { %v284_v18 = vunpack.c.0.s8 %v283_v15 }
  0x95   : > { %235 = vst.msk [vmem:[#allocation2 + $0x21] sm:$0xff] %vm231_vm2, %v3337_v19  ;;  %233 = vst.msk [vmem:[#allocation2 + $0x9] sm:$0xff] %vm231_vm2, %v3336_v20 }
  0x96   : > { %234 = vst.msk [vmem:[#allocation2 + $0x19] sm:$0xff] %vm231_vm2, %v3347_v21  ;;  %232 = vst.msk [vmem:[#allocation2 + $0x1] sm:$0xff] %vm231_vm2, %v3346_v22  ;;  %v3340_v23 = vpop.permute.xlu0 %3339  ;;  %v3350_v24 = vpop.permute.xlu1 %3349 }
  0x97   : > { %v3342_v25 = vunpack.i.h.bf16 %v3340_v23  ;;  %v3341_v26 = vunpack.i.l.bf16 %v3340_v23  ;;  %v3352_v27 = vunpack.i.h.bf16 %v3350_v24  ;;  %v3351_v28 = vunpack.i.l.bf16 %v3350_v24 }
  0x99   : > { %239 = vst.msk [vmem:[#allocation2 + $0x51] sm:$0xff] %vm231_vm2, %v3342_v25  ;;  %237 = vst.msk [vmem:[#allocation2 + $0x39] sm:$0xff] %vm231_vm2, %v3341_v26  ;;  %v3666_v25 = vsub.s32 %v284_v18, %v3558_v35 }
  0x9a   : > { %238 = vst.msk [vmem:[#allocation2 + $0x49] sm:$0xff] %vm231_vm2, %v3352_v27  ;;  %236 = vst.msk [vmem:[#allocation2 + $0x31] sm:$0xff] %vm231_vm2, %v3351_v28 }
  0x9c   : > { %v1493_v32 = vld [vmem:[#allocation2 + $0x9] sm:$0xff]  ;;  %v1495_v33 = vld [vmem:[#allocation2 + $0x21] sm:$0xff] }
  0x9d   : > { %1510 = vrot.lane.b32.xlu0 %v1493_v32, %s3449_s30  ;;  %1514 = vrot.lane.b32.xlu1 %v1495_v33, %s3449_s30  ;;  %v243_v36 = vld [vmem:[#allocation2 + $0x20] sm:$0xff]  ;;  %v3562_v37 = vld [vmem:[#allocation2 + $0x18] sm:$0xff]  ;;  %v241_v43 = vld [vmem:[#allocation2 + $0x8] sm:$0xff] }
  0x9e   : > { %v1494_v40 = vld [vmem:[#allocation2 + $0x19] sm:$0xff]  ;;  %v1492_v46 = vld [vmem:[#allocation2 + $0x1] sm:$0xff]  ;;  %v2451_v7 = vld [vmem:[#allocation2 + $0xa] sm:$0xff] }
  0x9f   : > { %v3567_v42 = vld [vmem:[#allocation2] sm:$0xff] }
  0xa0   : > { %v1497_v38 = vld [vmem:[#allocation2 + $0x39] sm:$0xff]  ;;  %v1499_v39 = vld [vmem:[#allocation2 + $0x51] sm:$0xff]  ;;  %v2453_v6 = vld [vmem:[#allocation2 + $0x22] sm:$0xff] }
  0xa1   : > { %1518 = vrot.lane.b32.xlu0 %v1497_v38, %s3449_s30  ;;  %1522 = vrot.lane.b32.xlu1 %v1499_v39, %s3449_s30  ;;  %v247_v44 = vld [vmem:[#allocation2 + $0x50] sm:$0xff]  ;;  %v245_v45 = vld [vmem:[#allocation2 + $0x38] sm:$0xff]  ;;  %v3571_v51 = vld [vmem:[#allocation2 + $0x48] sm:$0xff] }
  0xa2   : > { %v332_v47 = vcombine.low %v243_v36, %v247_v44  ;;  %v333_v48 = vcombine.high %v243_v36, %v247_v44  ;;  %v316_v49 = vcombine.low %v241_v43, %v245_v45  ;;  %v317_v50 = vcombine.high %v241_v43, %v245_v45  ;;  %v3573_v52 = vld [vmem:[#allocation2 + $0x30] sm:$0xff]  ;;  %v2455_v9 = vld [vmem:[#allocation2 + $0x3a] sm:$0xff]  ;;  %v2450_v11 = vld [vmem:[#allocation2 + $0x2] sm:$0xff] }
  0xa3   : > { %v265_v53 = vcombine.high %v3562_v37, %v3571_v51  ;;  %v249_v54 = vcombine.high %v3567_v42, %v3573_v52  ;;  %v1498_v59 = vld [vmem:[#allocation2 + $0x49] sm:$0xff]  ;;  %v1496_v60 = vld [vmem:[#allocation2 + $0x31] sm:$0xff]  ;;  %v2452_v10 = vld [vmem:[#allocation2 + $0x1a] sm:$0xff]  ;;  %v264_v16 = vcombine.low %v3562_v37, %v3571_v51  ;;  %v248_v17 = vcombine.low %v3567_v42, %v3573_v52 }
  0xa4   : > { %v3580_v55 = vrot.slane %v332_v47, %v3565_v41  ;;  %v3583_v56 = vrot.slane %v333_v48, %v3565_v41  ;;  %v3586_v57 = vrot.slane %v316_v49, %v3565_v41  ;;  %v3589_v58 = vrot.slane %v317_v50, %v3565_v41  ;;  %v2457_v8 = vld [vmem:[#allocation2 + $0x52] sm:$0xff]  ;;  %v2456_v12 = vld [vmem:[#allocation2 + $0x4a] sm:$0xff] }
  0xa5   : > { %1512 = vrot.lane.b32.xlu1 %v1494_v40, %s3449_s30  ;;  %1508 = vrot.lane.b32.xlu0 %v1492_v46, %s3449_s30  ;;  %v3594_v61 = vrot.slane %v265_v53, %v3565_v41  ;;  %v3597_v62 = vrot.slane %v249_v54, %v3565_v41  ;;  %v2454_v13 = vld [vmem:[#allocation2 + $0x32] sm:$0xff]  ;;  %v272_v19 = vrot.slane %v264_v16, %v3565_v41 }
  0xa6   : > { %v349_v63 = vcombine.high %v3586_v57, %v3580_v55  ;;  %v364_v1 = vcombine.low %v3589_v58, %v3583_v56  ;;  %v365_v3 = vcombine.high %v3589_v58, %v3583_v56  ;;  %v348_v4 = vcombine.low %v3586_v57, %v3580_v55 }
  0xa7   : > { %v296_v2 = vcombine.low %v3597_v62, %v3594_v61  ;;  %v297_v5 = vcombine.high %v3597_v62, %v3594_v61  ;;  %v256_v20 = vrot.slane %v248_v17, %v3565_v41  ;;  %v2228_v21 = vcombine.low %v2451_v7, %v2455_v9 }
  0xa8   : > { %v2244_v22 = vcombine.low %v2453_v6, %v2457_v8  ;;  %v2160_v23 = vcombine.low %v2450_v11, %v2454_v13  ;;  %v2176_v24 = vcombine.low %v2452_v10, %v2456_v12  ;;  %v363_v31 = vrot.slane %v349_v63, %v3666_v25 }
  0xa9   : > { %1520 = vrot.lane.b32.xlu1 %v1498_v59, %s3449_s30  ;;  %1516 = vrot.lane.b32.xlu0 %v1496_v60, %s3449_s30  ;;  %v281_v26 = vcombine.high %v256_v20, %v272_v19  ;;  %v2236_v27 = vrot.slane %v2228_v21, %v3565_v41  ;;  %v2229_v34 = vcombine.high %v2451_v7, %v2455_v9 }
  0xaa   : > { %v2252_v28 = vrot.slane %v2244_v22, %v3565_v41  ;;  %v2168_v29 = vrot.slane %v2160_v23, %v3565_v41  ;;  %v2184_v30 = vrot.slane %v2176_v24, %v3565_v41  ;;  %v304_v47 = vrot.slane %v296_v2, %v3666_v25 }
  0xab   : > { %v3715_v50 = vrot.slane %v348_v4, %v3666_v25  ;;  %v280_v54 = vcombine.low %v256_v20, %v272_v19 }
  0xac   : > { %v2193_v35 = vcombine.high %v2168_v29, %v2184_v30  ;;  %v2260_v53 = vcombine.low %v2236_v27, %v2252_v28  ;;  %v2192_v63 = vcombine.low %v2168_v29, %v2184_v30  ;;  %v314_v20 = vcombine.high %v304_v47, %v4831_v0 }
  0xad   : > { %476 = vrot.lane.b32.xlu1 %v243_v36, %s3449_s30  ;;  %472 = vrot.lane.b32.xlu0 %v241_v43, %s3449_s30  ;;  %4836 = vst [vmem:[#allocation6_spill] sm:$0xff] %v3715_v50  ;;  %v380_v55 = vcombine.high %v3715_v50, %v4831_v0 }
  0xae   : > { %v3728_v57 = vrot.slane %v2260_v53, %v3666_v25 }
  0xb0   : > { %4837 = vst [vmem:[#allocation7_spill] sm:$0xff] %v3728_v57  ;;  %v2292_v58 = vcombine.high %v3728_v57, %v4831_v0 }
  0xb1   : > { %484 = vrot.lane.b32.xlu1 %v247_v44, %s3449_s30  ;;  %480 = vrot.lane.b32.xlu0 %v245_v45, %s3449_s30 }
  0xb5   : > { %1844 = vrot.lane.b32.xlu1 %v1495_v33, %s3450_s4  ;;  %1840 = vrot.lane.b32.xlu0 %v1493_v32, %s3450_s4  ;;  %v295_v32 = vrot.slane %v281_v26, %v3666_v25  ;;  %v2261_v33 = vcombine.high %v2236_v27, %v2252_v28 }
  0xb9   : > { %1852 = vrot.lane.b32.xlu1 %v1499_v39, %s3450_s4  ;;  %1848 = vrot.lane.b32.xlu0 %v1497_v38, %s3450_s4  ;;  %v2177_v38 = vcombine.high %v2452_v10, %v2456_v12  ;;  %v2275_v39 = vrot.slane %v2261_v33, %v3666_v25 }
  0xbd   : > { %474 = vrot.lane.b32.xlu1 %v3562_v37, %s3449_s30  ;;  %470 = vrot.lane.b32.xlu0 %v3567_v42, %s3449_s30 }
  0xc1   : > { %482 = vrot.lane.b32.xlu1 %v3571_v51, %s3449_s30  ;;  %478 = vrot.lane.b32.xlu0 %v3573_v52, %s3449_s30 }
  0xc5   : > { %1842 = vrot.lane.b32.xlu1 %v1494_v40, %s3450_s4  ;;  %1838 = vrot.lane.b32.xlu0 %v1492_v46, %s3450_s4  ;;  %v3683_v40 = vrot.slane %v2229_v34, %v3565_v41  ;;  %v372_v46 = vrot.slane %v364_v1, %v3666_v25 }
  0xc7   : > { %v382_v15 = vcombine.high %v372_v46, %v4831_v0 }
  0xc9   : > { %1850 = vrot.lane.b32.xlu1 %v1498_v59, %s3450_s4  ;;  %1846 = vrot.lane.b32.xlu0 %v1496_v60, %s3450_s4  ;;  %v379_v59 = vrot.slane %v365_v3, %v3666_v25  ;;  %v3731_v60 = vrot.slane %v280_v54, %v3666_v25  ;;  %v3744_v3 = vrot.slane %v2192_v63, %v3666_v25 }
  0xcb   : > { %4838 = vst [vmem:[#allocation8_spill] sm:$0xff] %v3731_v60  ;;  %v312_v2 = vcombine.high %v3731_v60, %v4831_v0  ;;  %4839 = vst [vmem:[#allocation9_spill] sm:$0xff] %v3744_v3  ;;  %v383_v34 = vcombine.high %v379_v59, %v4831_v0 }
  0xcd   : > { %886 = vrot.lane.b32.xlu1 %v243_v36, %s3450_s4  ;;  %882 = vrot.lane.b32.xlu0 %v241_v43, %s3450_s4  ;;  %v2245_v36 = vcombine.high %v2453_v6, %v2457_v8 }
  0xcf   : > { %v3687_v43 = vrot.slane %v2245_v36, %v3565_v41 }
  0xd1   : > { %894 = vrot.lane.b32.xlu1 %v247_v44, %s3450_s4  ;;  %890 = vrot.lane.b32.xlu0 %v245_v45, %s3450_s4  ;;  %v3693_v45 = vrot.slane %v2177_v38, %v3565_v41  ;;  %v2276_v48 = vcombine.low %v3683_v40, %v3687_v43  ;;  %v2277_v21 = vcombine.high %v3683_v40, %v3687_v43 }
  0xd3   : > { %v2291_v24 = vrot.slane %v2277_v21, %v3666_v25 }
  0xd5   : > { %2472 = vrot.lane.b32.xlu1 %v2453_v6, %s3449_s30  ;;  %2468 = vrot.lane.b32.xlu0 %v2451_v7, %s3449_s30  ;;  %v2295_v36 = vcombine.high %v2291_v24, %v4831_v0 }
  0xd9   : > { %2480 = vrot.lane.b32.xlu1 %v2457_v8, %s3449_s30  ;;  %2476 = vrot.lane.b32.xlu0 %v2455_v9, %s3449_s30 }
  0xdd   : > { %884 = vrot.lane.b32.xlu1 %v3562_v37, %s3450_s4  ;;  %880 = vrot.lane.b32.xlu0 %v3567_v42, %s3450_s4  ;;  %v2161_v37 = vcombine.high %v2450_v11, %v2454_v13  ;;  %v2207_v42 = vrot.slane %v2193_v35, %v3666_v25  ;;  %v311_v35 = vrot.slane %v297_v5, %v3666_v25 }
  0xdf   : > { %v3690_v44 = vrot.slane %v2161_v37, %v3565_v41  ;;  %v2225_v16 = vcombine.high %v2207_v42, %v4831_v0 }
  0xe1   : > { %892 = vrot.lane.b32.xlu1 %v3571_v51, %s3450_s4  ;;  %888 = vrot.lane.b32.xlu0 %v3573_v52, %s3450_s4  ;;  %v2208_v49 = vcombine.low %v3690_v44, %v3693_v45  ;;  %v2284_v51 = vrot.slane %v2276_v48, %v3666_v25  ;;  %v2209_v27 = vcombine.high %v3690_v44, %v3693_v45 }
  0xe3   : > { %v2216_v52 = vrot.slane %v2208_v49, %v3666_v25  ;;  %v2294_v19 = vcombine.high %v2284_v51, %v4831_v0  ;;  %v2223_v37 = vrot.slane %v2209_v27, %v3666_v25  ;;  %v315_v49 = vcombine.high %v311_v35, %v4831_v0 }
  0xe5   : > { %2470 = vrot.lane.b32.xlu1 %v2452_v10, %s3449_s30  ;;  %2466 = vrot.lane.b32.xlu0 %v2450_v11, %s3449_s30  ;;  %v2226_v26 = vcombine.high %v2216_v52, %v4831_v0  ;;  %v2227_v48 = vcombine.high %v2223_v37, %v4831_v0 }
  0xe9   : > { %2478 = vrot.lane.b32.xlu1 %v2456_v12, %s3449_s30  ;;  %2474 = vrot.lane.b32.xlu0 %v2454_v13, %s3449_s30  ;;  %s4772_s30 = scalar_lea.hbm %s4817_s3, %s3244_s25 }
  0xed   : > { %2802 = vrot.lane.b32.xlu1 %v2453_v6, %s3450_s4  ;;  %2798 = vrot.lane.b32.xlu0 %v2451_v7, %s3450_s4  ;;  %v381_v7 = vcombine.high %v363_v31, %v4831_v0 }
  0xf1   : > { %2810 = vrot.lane.b32.xlu1 %v2457_v8, %s3450_s4  ;;  %2806 = vrot.lane.b32.xlu0 %v2455_v9, %s3450_s4  ;;  %v2224_v8 = vcombine.high %v3744_v3, %v4831_v0 }
  0xf5   : > { %2800 = vrot.lane.b32.xlu1 %v2452_v10, %s3450_s4  ;;  %2796 = vrot.lane.b32.xlu0 %v2450_v11, %s3450_s4  ;;  %v2293_v11 = vcombine.high %v2275_v39, %v4831_v0 }
  0xf9   : > { %2808 = vrot.lane.b32.xlu1 %v2456_v12, %s3450_s4  ;;  %2804 = vrot.lane.b32.xlu0 %v2454_v13, %s3450_s4  ;;  %v313_v12 = vcombine.high %v295_v32, %v4831_v0  ;;  %s3123_s4 = scalar_lea.sflag [#allocation4], %s161_s20 }
  0xfd   : > { %417 = vrot.lane.b32.xlu1 %v363_v31, %s3452_s5  ;;  %389 = vrot.lane.b32.xlu0 %v295_v32, %s3452_s5 }
 0x101   : > { %2329 = vrot.lane.b32.xlu1 %v2275_v39, %s3452_s5  ;;  %2301 = vrot.lane.b32.xlu0 %v2207_v42, %s3452_s5 }
 0x105   : > { %425 = vrot.lane.b32.xlu1 %v372_v46, %s3453_s6  ;;  %397 = vrot.lane.b32.xlu0 %v304_v47, %s3453_s6 }
 0x109   : > { %2337 = vrot.lane.b32.xlu1 %v2284_v51, %s3453_s6  ;;  %2309 = vrot.lane.b32.xlu0 %v2216_v52, %s3453_s6 }
 0x10d   : > { %433 = vrot.lane.b32.xlu1 %v379_v59, %s3454_s7  ;;  %413 = vrot.lane.b32.xlu0 %v380_v55, %s3455_s8 }
 0x10f   : > { %v3735_v1 = vpop.permute.xlu0 %1510  ;;  %v3737_v56 = vpop.permute.xlu1 %1514 }
 0x111   : > { %2325 = vrot.lane.b32.xlu1 %v2292_v58, %s3455_s8  ;;  %385 = vrot.lane.b32.xlu0 %v312_v2, %s3455_s8 }
 0x113   : > { %v1519_v4 = vpop.permute.xlu0 %1518  ;;  %v1523_v6 = vpop.permute.xlu1 %1522 }
 0x114   : > { %v1600_v28 = vcombine.low %v3735_v1, %v1519_v4  ;;  %v1616_v29 = vcombine.low %v3737_v56, %v1523_v6  ;;  %v1601_v38 = vcombine.high %v3735_v1, %v1519_v4  ;;  %v1617_v40 = vcombine.high %v3737_v56, %v1523_v6 }
 0x115   : > { %421 = vrot.lane.b32.xlu1 %v381_v7, %s3456_s9  ;;  %2297 = vrot.lane.b32.xlu0 %v2224_v8, %s3455_s8 }
 0x116   : > { %v3798_v39 = vrot.slane %v1600_v28, %v3565_v41  ;;  %v3802_v42 = vrot.slane %v1616_v29, %v3565_v41  ;;  %v1615_v46 = vrot.slane %v1601_v38, %v3565_v41  ;;  %v1631_v47 = vrot.slane %v1617_v40, %v3565_v41 }
 0x117   : > { %v1513_v9 = vpop.permute.xlu1 %1512  ;;  %v1509_v10 = vpop.permute.xlu0 %1508 }
 0x118   : > { %v1633_v55 = vcombine.high %v3798_v39, %v3802_v42  ;;  %v1648_v56 = vcombine.low %v1615_v46, %v1631_v47 }
 0x119   : > { %2333 = vrot.lane.b32.xlu1 %v2293_v11, %s3456_s9  ;;  %393 = vrot.lane.b32.xlu0 %v313_v12, %s3456_s9 }
 0x11a   : > { %v3836_v6 = vrot.slane %v1633_v55, %v3666_v25 }
 0x11b   : > { %v1521_v13 = vpop.permute.xlu1 %1520  ;;  %v1517_v14 = vpop.permute.xlu0 %1516 }
 0x11c   : > { %v1548_v30 = vcombine.low %v1513_v9, %v1521_v13  ;;  %v1532_v31 = vcombine.low %v1509_v10, %v1517_v14  ;;  %v1549_v61 = vcombine.high %v1513_v9, %v1521_v13  ;;  %v1533_v5 = vcombine.high %v1509_v10, %v1517_v14 }
 0x11d   : > { %429 = vrot.lane.b32.xlu1 %v382_v15, %s3457_s10  ;;  %2305 = vrot.lane.b32.xlu0 %v2225_v16, %s3456_s9  ;;  %v3853_v14 = vrot.slane %v1648_v56, %v3666_v25  ;;  %v1649_v15 = vcombine.high %v1615_v46, %v1631_v47 }
 0x11e   : > { %v3805_v62 = vrot.slane %v1548_v30, %v3565_v41  ;;  %v3808_v43 = vrot.slane %v1532_v31, %v3565_v41  ;;  %v1563_v51 = vrot.slane %v1549_v61, %v3565_v41  ;;  %v1547_v52 = vrot.slane %v1533_v5, %v3565_v41 }
 0x11f   : > { %v3761_v17 = vpop.permute.xlu1 %476  ;;  %v3763_v18 = vpop.permute.xlu0 %472 }
 0x120   : > { %v1565_v59 = vcombine.high %v3808_v43, %v3805_v62  ;;  %v1580_v7 = vcombine.low %v1547_v52, %v1563_v51 }
 0x121   : > { %2341 = vrot.lane.b32.xlu1 %v2294_v19, %s3457_s10  ;;  %401 = vrot.lane.b32.xlu0 %v314_v20, %s3457_s10 }
 0x122   : > { %v3833_v4 = vrot.slane %v1565_v59, %v3666_v25 }
 0x123   : > { %v3771_v22 = vpop.permute.xlu1 %484  ;;  %v3773_v23 = vpop.permute.xlu0 %480 }
 0x124   : > { %v578_v63 = vcombine.low %v3761_v17, %v3771_v22  ;;  %v562_v1 = vcombine.low %v3763_v18, %v3773_v23  ;;  %v579_v27 = vcombine.high %v3761_v17, %v3771_v22  ;;  %v563_v28 = vcombine.high %v3763_v18, %v3773_v23 }
 0x125   : > { %2345 = vrot.lane.b32.xlu1 %v2291_v24, %s3454_s7  ;;  %2313 = vrot.lane.b32.xlu0 %v2226_v26, %s3457_s10  ;;  %v3862_v24 = vrot.slane %v1580_v7, %v3666_v25  ;;  %v1581_v26 = vcombine.high %v1547_v52, %v1563_v51  ;;  %v3884_v23 = vrot.slane %v1649_v15, %v3666_v25 }
 0x126   : > { %v3839_v10 = vrot.slane %v578_v63, %v3565_v41  ;;  %v3842_v11 = vrot.slane %v562_v1, %v3565_v41  ;;  %v577_v38 = vrot.slane %v563_v28, %v3565_v41  ;;  %v1597_v60 = vcombine.high %v3833_v4, %v4831_v0 }
 0x127   : > { %v3783_v32 = vpop.permute.xlu1 %1844  ;;  %v3785_v33 = vpop.permute.xlu0 %1840  ;;  %v3881_v18 = vrot.slane %v1581_v26, %v3666_v25 }
 0x128   : > { %v595_v29 = vcombine.high %v3842_v11, %v3839_v10 }
 0x129   : > { %437 = vrot.lane.b32.xlu1 %v383_v34, %s3458_s11  ;;  %405 = vrot.lane.b32.xlu0 %v311_v35, %s3454_s7 }
 0x12a   : > { %v3899_v47 = vrot.slane %v595_v29, %v3666_v25 }
 0x12b   : > { %v3810_v44 = vpop.permute.xlu1 %1852  ;;  %v3812_v45 = vpop.permute.xlu0 %1848 }
 0x12c   : > { %v1946_v12 = vcombine.low %v3783_v32, %v3810_v44  ;;  %v1930_v13 = vcombine.low %v3785_v33, %v3812_v45  ;;  %v1947_v5 = vcombine.high %v3783_v32, %v3810_v44  ;;  %v1931_v46 = vcombine.high %v3785_v33, %v3812_v45 }
 0x12d   : > { %2349 = vrot.lane.b32.xlu1 %v2295_v36, %s3458_s11  ;;  %2317 = vrot.lane.b32.xlu0 %v2223_v37, %s3454_s7  ;;  %v593_v37 = vrot.slane %v579_v27, %v3565_v41 }
 0x12e   : > { %v3875_v30 = vrot.slane %v1946_v12, %v3565_v41  ;;  %v3878_v31 = vrot.slane %v1930_v13, %v3565_v41  ;;  %v1961_v55 = vrot.slane %v1947_v5, %v3565_v41  ;;  %v1945_v63 = vrot.slane %v1931_v46, %v3565_v41 }
 0x12f   : > { %v475_v53 = vpop.permute.xlu1 %474  ;;  %v471_v54 = vpop.permute.xlu0 %470  ;;  %v610_v56 = vcombine.low %v577_v38, %v593_v37  ;;  %v611_v28 = vcombine.high %v577_v38, %v593_v37 }
 0x130   : > { %v1963_v32 = vcombine.high %v3878_v31, %v3875_v30  ;;  %v1978_v26 = vcombine.low %v1945_v63, %v1961_v55 }
 0x131   : > { %2321 = vrot.lane.b32.xlu1 %v2227_v48, %s3458_s11  ;;  %409 = vrot.lane.b32.xlu0 %v315_v49, %s3458_s11  ;;  %v3975_v37 = vrot.slane %v611_v28, %v3666_v25  ;;  %v1632_v28 = vcombine.low %v3798_v39, %v3802_v42 }
 0x133   : > { %v483_v58 = vpop.permute.xlu1 %482  ;;  %v479_v2 = vpop.permute.xlu0 %478 }
 0x134   : > { %v510_v8 = vcombine.low %v475_v53, %v483_v58  ;;  %v494_v9 = vcombine.low %v471_v54, %v479_v2  ;;  %v511_v34 = vcombine.high %v475_v53, %v483_v58  ;;  %v495_v17 = vcombine.high %v471_v54, %v479_v2 }
 0x135   : > { %1673 = vrot.lane.b32.xlu1 %v3833_v4, %s3452_s5  ;;  %1701 = vrot.lane.b32.xlu0 %v3836_v6, %s3452_s5  ;;  %v1598_v4 = vcombine.high %v3862_v24, %v4831_v0 }
 0x136   : > { %v3856_v16 = vrot.slane %v510_v8, %v3565_v41  ;;  %v3859_v19 = vrot.slane %v494_v9, %v3565_v41  ;;  %v525_v48 = vrot.slane %v511_v34, %v3565_v41  ;;  %v509_v33 = vrot.slane %v495_v17, %v3565_v41 }
 0x137   : > { %v1843_v20 = vpop.permute.xlu1 %1842  ;;  %v1839_v21 = vpop.permute.xlu0 %1838  ;;  %v3936_v9 = vrot.slane %v1963_v32, %v3666_v25 }
 0x138   : > { %v527_v36 = vcombine.high %v3859_v19, %v3856_v16  ;;  %v542_v12 = vcombine.low %v509_v33, %v525_v48  ;;  %v543_v29 = vcombine.high %v509_v33, %v525_v48 }
 0x139   : > { %1681 = vrot.lane.b32.xlu1 %v3862_v24, %s3453_s6  ;;  %1709 = vrot.lane.b32.xlu0 %v3853_v14, %s3453_s6 }
 0x13a   : > { %v3916_v54 = vrot.slane %v527_v36, %v3666_v25  ;;  %v3965_v36 = vrot.slane %v1978_v26, %v3666_v25  ;;  %v3978_v38 = vrot.slane %v543_v29, %v3666_v25 }
 0x13b   : > { %v1851_v22 = vpop.permute.xlu1 %1850  ;;  %v1847_v35 = vpop.permute.xlu0 %1846 }
 0x13c   : > { %v1878_v40 = vcombine.low %v1843_v20, %v1851_v22  ;;  %v1862_v61 = vcombine.low %v1839_v21, %v1847_v35  ;;  %v1879_v44 = vcombine.high %v1843_v20, %v1851_v22  ;;  %v1863_v45 = vcombine.high %v1839_v21, %v1847_v35 }
 0x13d   : > { %1689 = vrot.lane.b32.xlu1 %v3881_v18, %s3454_s7  ;;  %1717 = vrot.lane.b32.xlu0 %v3884_v23, %s3454_s7  ;;  %v3947_v20 = vrot.slane %v610_v56, %v3666_v25  ;;  %v3950_v21 = vrot.slane %v542_v12, %v3666_v25 }
 0x13e   : > { %v3903_v49 = vrot.slane %v1878_v40, %v3565_v41  ;;  %v3906_v51 = vrot.slane %v1862_v61, %v3565_v41  ;;  %v1893_v58 = vrot.slane %v1879_v44, %v3565_v41  ;;  %v1877_v2 = vrot.slane %v1863_v45, %v3565_v41 }
 0x13f   : > { %v3911_v52 = vpop.permute.xlu1 %886  ;;  %v3913_v53 = vpop.permute.xlu0 %882  ;;  %v1979_v61 = vcombine.high %v1945_v63, %v1961_v55 }
 0x140   : > { %v1895_v59 = vcombine.high %v3906_v51, %v3903_v49  ;;  %v1910_v27 = vcombine.low %v1877_v2, %v1893_v58  ;;  %v1911_v5 = vcombine.high %v1877_v2, %v1893_v58 }
 0x141   : > { %663 = vrot.lane.b32.xlu1 %v3899_v47, %s3452_s5  ;;  %635 = vrot.lane.b32.xlu0 %v3916_v54, %s3452_s5 }
 0x142   : > { %v3927_v1 = vrot.slane %v1895_v59, %v3666_v25  ;;  %v3968_v40 = vrot.slane %v1910_v27, %v3666_v25  ;;  %v3999_v59 = vrot.slane %v1979_v61, %v3666_v25  ;;  %v4014_v12 = vrot.slane %v1911_v5, %v3666_v25 }
 0x143   : > { %v3931_v7 = vpop.permute.xlu1 %894  ;;  %v3933_v8 = vpop.permute.xlu0 %890 }
 0x144   : > { %v988_v34 = vcombine.low %v3911_v52, %v3931_v7  ;;  %v972_v17 = vcombine.low %v3913_v53, %v3933_v8 }
 0x145   : > { %2031 = vrot.lane.b32.xlu1 %v3936_v9, %s3452_s5  ;;  %2003 = vrot.lane.b32.xlu0 %v3927_v1, %s3452_s5 }
 0x146   : > { %v3981_v46 = vrot.slane %v988_v34, %v3565_v41  ;;  %v3984_v48 = vrot.slane %v972_v17, %v3565_v41  ;;  %v1564_v17 = vcombine.low %v3808_v43, %v3805_v62  ;;  %v4051_v62 = vrot.slane %v1632_v28, %v3666_v25 }
 0x147   : > { %v3942_v13 = vpop.permute.xlu1 %2472  ;;  %v3944_v15 = vpop.permute.xlu0 %2468 }
 0x148   : > { %v1005_v55 = vcombine.high %v3984_v48, %v3981_v46  ;;  %4840 = vst [vmem:[#allocation10_spill] sm:$0xff] %v4051_v62  ;;  %v1664_v28 = vcombine.high %v4051_v62, %v4831_v0 }
 0x149   : > { %671 = vrot.lane.b32.xlu1 %v3947_v20, %s3453_s6  ;;  %643 = vrot.lane.b32.xlu0 %v3950_v21, %s3453_s6 }
 0x14b   : > { %v3960_v22 = vpop.permute.xlu1 %2480  ;;  %v3962_v35 = vpop.permute.xlu0 %2476 }
 0x14c   : > { %v2574_v32 = vcombine.low %v3942_v13, %v3960_v22  ;;  %v2558_v33 = vcombine.low %v3944_v15, %v3962_v35 }
 0x14d   : > { %2039 = vrot.lane.b32.xlu1 %v3965_v36, %s3453_s6  ;;  %2011 = vrot.lane.b32.xlu0 %v3968_v40, %s3453_s6 }
 0x14e   : > { %v4004_v63 = vrot.slane %v2574_v32, %v3565_v41  ;;  %v4007_v56 = vrot.slane %v2558_v33, %v3565_v41  ;;  %v4041_v33 = vrot.slane %v1005_v55, %v3666_v25  ;;  %v4061_v55 = vrot.slane %v1564_v17, %v3666_v25 }
 0x14f   : > { %v3990_v44 = vpop.permute.xlu1 %884  ;;  %v3992_v45 = vpop.permute.xlu0 %880  ;;  %v1665_v17 = vcombine.high %v3836_v6, %v4831_v0  ;;  %v1962_v6 = vcombine.low %v3878_v31, %v3875_v30 }
 0x150   : > { %v2591_v61 = vcombine.high %v4007_v56, %v4004_v63  ;;  %4841 = vst [vmem:[#allocation11_spill] sm:$0xff] %v4061_v55 }
 0x151   : > { %679 = vrot.lane.b32.xlu1 %v3975_v37, %s3454_s7  ;;  %651 = vrot.lane.b32.xlu0 %v3978_v38, %s3454_s7  ;;  %v4115_v31 = vrot.slane %v1962_v6, %v3666_v25 }
 0x153   : > { %v4009_v58 = vpop.permute.xlu1 %892  ;;  %v4011_v2 = vpop.permute.xlu0 %888 }
 0x154   : > { %v920_v26 = vcombine.low %v3990_v44, %v4009_v58  ;;  %v904_v27 = vcombine.low %v3992_v45, %v4011_v2 }
 0x155   : > { %2047 = vrot.lane.b32.xlu1 %v3999_v59, %s3454_s7  ;;  %2019 = vrot.lane.b32.xlu0 %v4014_v12, %s3454_s7 }
 0x156   : > { %v4027_v29 = vrot.slane %v920_v26, %v3565_v41  ;;  %v4030_v34 = vrot.slane %v904_v27, %v3565_v41  ;;  %v4058_v27 = vrot.slane %v2591_v61, %v3666_v25  ;;  %v1596_v61 = vcombine.high %v4061_v55, %v4831_v0 }
 0x157   : > { %v4036_v5 = vpop.permute.xlu1 %2470  ;;  %v4038_v32 = vpop.permute.xlu0 %2466  ;;  %v594_v55 = vcombine.low %v3842_v11, %v3839_v10  ;;  %v1667_v10 = vcombine.high %v3884_v23, %v4831_v0 }
 0x158   : > { %v937_v39 = vcombine.high %v4030_v34, %v4027_v29 }
 0x159   : > { %1073 = vrot.lane.b32.xlu1 %v4041_v33, %s3452_s5  ;;  %v4106_v11 = vrot.slane %v594_v55, %v3666_v25 }
 0x15a   : > { %v4048_v42 = vrot.slane %v937_v39, %v3666_v25 }
 0x15b   : > { %v4053_v43 = vpop.permute.xlu1 %2478  ;;  %v4055_v26 = vpop.permute.xlu0 %2474 }
 0x15c   : > { %1045 = vrot.lane.b32.xlu0 %v4048_v42, %s3452_s5 }
 0x15d   : > { %2659 = vrot.lane.b32.xlu1 %v4058_v27, %s3452_s5 }
 0x15f   : > { %v4069_v39 = vpop.permute.xlu1 %2802  ;;  %v4071_v3 = vpop.permute.xlu0 %2798 }
 0x160   : > { %1697 = vrot.lane.b32.xlu0 %v1664_v28, %s3455_s8  ;;  %v1666_v28 = vcombine.high %v3853_v14, %v4831_v0  ;;  %v1599_v14 = vcombine.high %v3881_v18, %v4831_v0 }
 0x161   : > { %1669 = vrot.lane.b32.xlu1 %v1596_v61, %s3455_s8 }
 0x163   : > { %v4081_v57 = vpop.permute.xlu1 %2810  ;;  %v4083_v50 = vpop.permute.xlu0 %2806 }
 0x164   : > { %1705 = vrot.lane.b32.xlu0 %v1665_v17, %s3456_s9  ;;  %v1994_v17 = vcombine.high %v4115_v31, %v4831_v0 }
 0x165   : > { %1677 = vrot.lane.b32.xlu1 %v1597_v60, %s3456_s9  ;;  %v526_v60 = vcombine.low %v3859_v19, %v3856_v16  ;;  %v1894_v16 = vcombine.low %v3906_v51, %v3903_v49  ;;  %v626_v19 = vcombine.high %v4106_v11, %v4831_v0 }
 0x167   : > { %v4095_v61 = vpop.permute.xlu1 %2800  ;;  %v4097_v62 = vpop.permute.xlu0 %2796  ;;  %v4124_v23 = vrot.slane %v526_v60, %v3666_v25  ;;  %v4137_v51 = vrot.slane %v1894_v16, %v3666_v25 }
 0x168   : > { %1713 = vrot.lane.b32.xlu0 %v1666_v28, %s3457_s10  ;;  %v627_v28 = vcombine.high %v3899_v47, %v4831_v0  ;;  %v559_v47 = vcombine.high %v3916_v54, %v4831_v0 }
 0x169   : > { %1685 = vrot.lane.b32.xlu1 %v1598_v4, %s3457_s10  ;;  %v558_v49 = vcombine.high %v4124_v23, %v4831_v0  ;;  %v1926_v60 = vcombine.high %v4137_v51, %v4831_v0 }
 0x16b   : > { %v4110_v24 = vpop.permute.xlu1 %2808  ;;  %v4112_v30 = vpop.permute.xlu0 %2804 }
 0x16c   : > { %1721 = vrot.lane.b32.xlu0 %v1667_v10, %s3458_s11  ;;  %v1995_v10 = vcombine.high %v3936_v9, %v4831_v0  ;;  %v1927_v9 = vcombine.high %v3927_v1, %v4831_v0 }
 0x16d   : > { %1693 = vrot.lane.b32.xlu1 %v1599_v14, %s3458_s11 }
 0x16f   : > { %v4126_v18 = vpop.permute.xlu1 %417  ;;  %v4128_v55 = vpop.permute.xlu0 %389 }
 0x170   : > { %659 = vrot.lane.b32.xlu0 %v626_v19, %s3455_s8  ;;  %v628_v19 = vcombine.high %v3947_v20, %v4831_v0  ;;  %v560_v20 = vcombine.high %v3950_v21, %v4831_v0  ;;  %v2506_v21 = vcombine.low %v4036_v5, %v4053_v43 }
 0x171   : > { %2027 = vrot.lane.b32.xlu1 %v1994_v17, %s3455_s8 }
 0x173   : > { %v4141_v6 = vpop.permute.xlu1 %2329  ;;  %v4143_v4 = vpop.permute.xlu0 %2301 }
 0x174   : > { %631 = vrot.lane.b32.xlu0 %v558_v49, %s3455_s8 }
 0x175   : > { %667 = vrot.lane.b32.xlu1 %v627_v28, %s3456_s9  ;;  %v1996_v28 = vcombine.high %v3965_v36, %v4831_v0  ;;  %v1004_v36 = vcombine.low %v3984_v48, %v3981_v46  ;;  %v936_v46 = vcombine.low %v4030_v34, %v4027_v29  ;;  %v2514_v48 = vrot.slane %v2506_v21, %v3565_v41 }
 0x176   : > { %v989_v29 = vcombine.high %v3911_v52, %v3931_v7  ;;  %v973_v21 = vcombine.high %v3913_v53, %v3933_v8  ;;  %v2575_v8 = vcombine.high %v3942_v13, %v3960_v22 }
 0x177   : > { %v4151_v14 = vpop.permute.xlu1 %425  ;;  %v4153_v16 = vpop.permute.xlu0 %397 }
 0x178   : > { %4842 = vst [vmem:[#allocation12_spill] sm:$0xff] %v4153_v16  ;;  %1999 = vrot.lane.b32.xlu0 %v1926_v60, %s3455_s8  ;;  %v1003_v52 = vrot.slane %v989_v29, %v3565_v41  ;;  %v987_v53 = vrot.slane %v973_v21, %v3565_v41  ;;  %v1037_v29 = vcombine.high %v4041_v33, %v4831_v0 }
 0x179   : > { %2035 = vrot.lane.b32.xlu1 %v1995_v10, %s3456_s9  ;;  %v629_v10 = vcombine.high %v3975_v37, %v4831_v0  ;;  %v2490_v37 = vcombine.low %v4038_v32, %v4055_v26  ;;  %v2589_v13 = vrot.slane %v2575_v8, %v3565_v41  ;;  %v2623_v33 = vcombine.high %v4058_v27, %v4831_v0 }
 0x17b   : > { %v4161_v17 = vpop.permute.xlu1 %2337  ;;  %v4163_v49 = vpop.permute.xlu0 %2309 }
 0x17c   : > { %4843 = vst [vmem:[#allocation13_spill] sm:$0xff] %v4161_v17  ;;  %4844 = vst [vmem:[#allocation14_spill] sm:$0xff] %v4163_v49  ;;  %639 = vrot.lane.b32.xlu0 %v559_v47, %s3456_s9 }
 0x17d   : > { %675 = vrot.lane.b32.xlu1 %v628_v19, %s3457_s10  ;;  %v1928_v19 = vcombine.high %v3968_v40, %v4831_v0  ;;  %v561_v40 = vcombine.high %v3978_v38, %v4831_v0 }
 0x17f   : > { %v4171_v60 = vpop.permute.xlu1 %433  ;;  %v4173_v54 = vpop.permute.xlu0 %413 }
 0x180   : > { %4845 = vst [vmem:[#allocation15_spill] sm:$0xff] %v4171_v60  ;;  %2007 = vrot.lane.b32.xlu0 %v1927_v9, %s3456_s9  ;;  %v2590_v9 = vcombine.low %v4007_v56, %v4004_v63  ;;  %v2498_v63 = vrot.slane %v2490_v37, %v3565_v41  ;;  %v1929_v56 = vcombine.high %v4014_v12, %v4831_v0 }
 0x181   : > { %2043 = vrot.lane.b32.xlu1 %v1996_v28, %s3457_s10  ;;  %v1997_v28 = vcombine.high %v3999_v59, %v4831_v0  ;;  %v4212_v59 = vrot.slane %v1004_v36, %v3666_v25  ;;  %v4230_v12 = vrot.slane %v936_v46, %v3666_v25  ;;  %v2559_v46 = vcombine.high %v3944_v15, %v3962_v35 }
 0x182   : > { %v4221_v38 = vrot.slane %v2590_v9, %v3666_v25  ;;  %v2522_v34 = vcombine.low %v2498_v63, %v2514_v48 }
 0x183   : > { %v4181_v47 = vpop.permute.xlu1 %2325  ;;  %v4183_v1 = vpop.permute.xlu0 %385  ;;  %4846 = vst [vmem:[#allocation16_spill] sm:$0xff] %v4212_v59  ;;  %v1036_v36 = vcombine.high %v4212_v59, %v4831_v0  ;;  %4848 = vst [vmem:[#allocation18_spill] sm:$0xff] %v4230_v12  ;;  %v968_v7 = vcombine.high %v4230_v12, %v4831_v0  ;;  %v2573_v15 = vrot.slane %v2559_v46, %v3565_v41 }
 0x184   : > { %647 = vrot.lane.b32.xlu0 %v560_v20, %s3457_s10  ;;  %4847 = vst [vmem:[#allocation17_spill] sm:$0xff] %v4221_v38 }
 0x185   : > { %683 = vrot.lane.b32.xlu1 %v629_v10, %s3458_s11  ;;  %v2606_v8 = vcombine.low %v2573_v15, %v2589_v13 }
 0x187   : > { %v4199_v20 = vpop.permute.xlu1 %421  ;;  %v4201_v10 = vpop.permute.xlu0 %2297 }
 0x188   : > { %2015 = vrot.lane.b32.xlu0 %v1928_v19, %s3457_s10 }
 0x189   : > { %2051 = vrot.lane.b32.xlu1 %v1997_v28, %s3458_s11  ;;  %v2622_v28 = vcombine.high %v4221_v38, %v4831_v0  ;;  %v3372_v38 = vld [vmem:[#allocation2 + $0x21] ss:$48 sps:$4 sm:$0xff]  }
 0x18b   : > { %v4216_v60 = vpop.permute.xlu1 %2333  ;;  %v4218_v19 = vpop.permute.xlu0 %393 }
 0x18c   : > { %655 = vrot.lane.b32.xlu0 %v561_v40, %s3458_s11  ;;  %v4246_v40 = vrot.slane %v2522_v34, %v3666_v25  ;;  %v2523_v34 = vcombine.high %v2498_v63, %v2514_v48  ;;  %v921_v48 = vcombine.high %v3990_v44, %v4009_v58  ;;  %v905_v63 = vcombine.high %v3992_v45, %v4011_v2 }
 0x18d   : > { %2023 = vrot.lane.b32.xlu1 %v1929_v56, %s3458_s11  ;;  %v2507_v45 = vcombine.high %v4036_v5, %v4053_v43  ;;  %v2491_v58 = vcombine.high %v4038_v32, %v4055_v26  ;;  %v969_v2 = vcombine.high %v4048_v42, %v4831_v0 }
 0x18e   : > { %4849 = vst [vmem:[#allocation19_spill] sm:$0xff] %v4246_v40  ;;  %v2554_v21 = vcombine.high %v4246_v40, %v4831_v0  ;;  %v935_v27 = vrot.slane %v921_v48, %v3565_v41  ;;  %v919_v44 = vrot.slane %v905_v63, %v3565_v41 }
 0x18f   : > { %v4234_v37 = vpop.permute.xlu1 %429  ;;  %v4236_v9 = vpop.permute.xlu0 %2305  ;;  %v2521_v48 = vrot.slane %v2507_v45, %v3565_v41  ;;  %v2505_v5 = vrot.slane %v2491_v58, %v3565_v41  ;;  %v2607_v58 = vcombine.high %v2573_v15, %v2589_v13 }
 0x190   : > { %1069 = vrot.lane.b32.xlu0 %v1036_v36, %s3455_s8 }
 0x191   : > { %2655 = vrot.lane.b32.xlu1 %v2622_v28, %s3455_s8  ;;  %v1020_v28 = vcombine.low %v987_v53, %v1003_v52  ;;  %v2538_v63 = vcombine.low %v2505_v5, %v2521_v48  ;;  %v2621_v15 = vrot.slane %v2607_v58, %v3666_v25  ;;  %v2539_v59 = vcombine.high %v2505_v5, %v2521_v48 }
 0x192   : > { %v1294_v5 = vrot.slane %v3372_v38, %v3565_v41  ;;  %v2836_v38 = vcombine.low %v4095_v61, %v4110_v24 }
 0x193   : > { %v4253_v56 = vpop.permute.xlu1 %2341  ;;  %v4255_v36 = vpop.permute.xlu0 %401  ;;  %v1028_v12 = vrot.slane %v1020_v28, %v3666_v25  ;;  %v2614_v28 = vrot.slane %v2606_v8, %v3666_v25 }
 0x194   : > { %4850 = vst [vmem:[#allocation20_spill] sm:$0xff] %v4253_v56  ;;  %4851 = vst [vmem:[#allocation21_spill] sm:$0xff] %v4255_v36  ;;  %1041 = vrot.lane.b32.xlu0 %v968_v7, %s3455_s8  ;;  %v2537_v7 = vrot.slane %v2523_v34, %v3666_v25 }
 0x195   : > { %1077 = vrot.lane.b32.xlu1 %v1037_v29, %s3456_s9  ;;  %v1038_v26 = vcombine.high %v1028_v12, %v4831_v0 }
 0x196   : > { %v2555_v32 = vcombine.high %v2537_v7, %v4831_v0 }
 0x197   : > { %v4265_v22 = vpop.permute.xlu1 %2345  ;;  %v4267_v35 = vpop.permute.xlu0 %2313 }
 0x198   : > { %4852 = vst [vmem:[#allocation22_spill] sm:$0xff] %v4265_v22  ;;  %4853 = vst [vmem:[#allocation23_spill] sm:$0xff] %v4267_v35  ;;  %2627 = vrot.lane.b32.xlu0 %v2554_v21, %s3455_s8 }
 0x199   : > { %2663 = vrot.lane.b32.xlu1 %v2623_v33, %s3456_s9  ;;  %v952_v33 = vcombine.low %v919_v44, %v935_v27 }
 0x19b   : > { %v4278_v46 = vpop.permute.xlu1 %437  ;;  %v4280_v29 = vpop.permute.xlu0 %405  ;;  %v960_v8 = vrot.slane %v952_v33, %v3666_v25 }
 0x19c   : > { %4854 = vst [vmem:[#allocation24_spill] sm:$0xff] %v4278_v46  ;;  %4855 = vst [vmem:[#allocation25_spill] sm:$0xff] %v4280_v29  ;;  %2631 = vrot.lane.b32.xlu0 %v2537_v7, %s3452_s5  ;;  %v2624_v7 = vcombine.high %v2614_v28, %v4831_v0  ;;  %v2625_v29 = vcombine.high %v2621_v15, %v4831_v0 }
 0x19d   : > { %1081 = vrot.lane.b32.xlu1 %v1028_v12, %s3453_s6  ;;  %v2546_v12 = vrot.slane %v2538_v63, %v3666_v25 }
 0x19f   : > { %v4293_v34 = vpop.permute.xlu1 %2349  ;;  %v4295_v21 = vpop.permute.xlu0 %2317 }
 0x1a0   : > { %4856 = vst [vmem:[#allocation26_spill] sm:$0xff] %v4293_v34  ;;  %4857 = vst [vmem:[#allocation27_spill] sm:$0xff] %v4295_v21  ;;  %1049 = vrot.lane.b32.xlu0 %v969_v2, %s3456_s9  ;;  %v1021_v2 = vcombine.high %v987_v53, %v1003_v52  ;;  %v970_v52 = vcombine.high %v960_v8, %v4831_v0  ;;  %v2904_v53 = vcombine.low %v4069_v39, %v4081_v57 }
 0x1a1   : > { %2667 = vrot.lane.b32.xlu1 %v2614_v28, %s3453_s6  ;;  %v2888_v28 = vcombine.low %v4071_v3, %v4083_v50 }
 0x1a2   : > { %v1035_v33 = vrot.slane %v1021_v2, %v3666_v25  ;;  %v953_v2 = vcombine.high %v919_v44, %v935_v27  ;;  %v3374_v27 = vld [vmem:[#allocation2 + $0x1] ss:$48 sps:$4 sm:$0xff]   ;;  %v3376_v44 = vld [vmem:[#allocation2 + $0x19] ss:$48 sps:$4 sm:$0xff]  }
 0x1a3   : > { %v4303_v43 = vpop.permute.xlu1 %2321  ;;  %v4305_v42 = vpop.permute.xlu0 %409 }
 0x1a4   : > { %4858 = vst [vmem:[#allocation28_spill] sm:$0xff] %v4303_v43  ;;  %4859 = vst [vmem:[#allocation29_spill] sm:$0xff] %v4305_v42  ;;  %2635 = vrot.lane.b32.xlu0 %v2555_v32, %s3456_s9  ;;  %v2912_v43 = vrot.slane %v2904_v53, %v3565_v41  ;;  %v2896_v42 = vrot.slane %v2888_v28, %v3565_v41  ;;  %v1039_v58 = vcombine.high %v1035_v33, %v4831_v0 }
 0x1a5   : > { %1085 = vrot.lane.b32.xlu1 %v1038_v26, %s3457_s10 }
 0x1a7   : > { %v4311_v40 = vpop.permute.xlu1 %1673  ;;  %v4313_v45 = vpop.permute.xlu0 %1701 }
 0x1a8   : > { %1053 = vrot.lane.b32.xlu0 %v960_v8, %s3453_s6  ;;  %v3370_v8 = vld [vmem:[#allocation2 + $0x9] ss:$48 sps:$4 sm:$0xff]  }
 0x1a9   : > { %2671 = vrot.lane.b32.xlu1 %v2624_v7, %s3457_s10  ;;  %v2556_v7 = vcombine.high %v2546_v12, %v4831_v0  ;;  %v1278_v48 = vrot.slane %v3370_v8, %v3565_v41  ;;  %v2820_v8 = vcombine.low %v4097_v62, %v4112_v30 }
 0x1ab   : > { %v4319_v32 = vpop.permute.xlu1 %1681  ;;  %v4321_v26 = vpop.permute.xlu0 %1709 }
 0x1ac   : > { %2639 = vrot.lane.b32.xlu0 %v2546_v12, %s3453_s6  ;;  %v967_v12 = vrot.slane %v953_v2, %v3666_v25  ;;  %v1226_v2 = vrot.slane %v3376_v44, %v3565_v41  ;;  %v2828_v44 = vrot.slane %v2820_v8, %v3565_v41 }
 0x1ad   : > { %1089 = vrot.lane.b32.xlu1 %v1035_v33, %s3454_s7  ;;  %v2553_v33 = vrot.slane %v2539_v59, %v3666_v25 }
 0x1ae   : > { %v971_v22 = vcombine.high %v967_v12, %v4831_v0 }
 0x1af   : > { %v4331_v63 = vpop.permute.xlu1 %1689  ;;  %v4333_v13 = vpop.permute.xlu0 %1717  ;;  %v2557_v59 = vcombine.high %v2553_v33, %v4831_v0 }
 0x1b0   : > { %1057 = vrot.lane.b32.xlu0 %v970_v52, %s3457_s10  ;;  %v2920_v52 = vcombine.low %v2896_v42, %v2912_v43 }
 0x1b1   : > { %2675 = vrot.lane.b32.xlu1 %v2621_v15, %s3454_s7 }
 0x1b2   : > { %v4371_v46 = vrot.slane %v2920_v52, %v3666_v25 }
 0x1b3   : > { %v4341_v21 = vpop.permute.xlu1 %663  ;;  %v4343_v34 = vpop.permute.xlu0 %635 }
 0x1b4   : > { %2643 = vrot.lane.b32.xlu0 %v2556_v7, %s3457_s10  ;;  %v1210_v7 = vrot.slane %v3374_v27, %v3565_v41  ;;  %4860 = vst [vmem:[#allocation30_spill] sm:$0xff] %v4371_v46  ;;  %v2844_v27 = vrot.slane %v2836_v38, %v3565_v41  ;;  %v2952_v52 = vcombine.high %v4371_v46, %v4831_v0 }
 0x1b5   : > { %1093 = vrot.lane.b32.xlu1 %v1039_v58, %s3458_s11  ;;  %v1302_v58 = vcombine.low %v1278_v48, %v1294_v5 }
 0x1b6   : > { %v2852_v38 = vcombine.low %v2828_v44, %v2844_v27 }
 0x1b7   : > { %v4351_v53 = vpop.permute.xlu1 %2031  ;;  %v4353_v28 = vpop.permute.xlu0 %2003  ;;  %v4379_v36 = vrot.slane %v1302_v58, %v3666_v25  ;;  %v2921_v58 = vcombine.high %v2896_v42, %v2912_v43  ;;  %v3379_v42 = vld [vmem:[#allocation2 + $0x25] ss:$48 sps:$4 sm:$0xff]  }
 0x1b8   : > { %1061 = vrot.lane.b32.xlu0 %v967_v12, %s3454_s7 }
 0x1b9   : > { %2679 = vrot.lane.b32.xlu1 %v2625_v29, %s3458_s11  ;;  %v1234_v29 = vcombine.low %v1210_v7, %v1226_v2  ;;  %4861 = vst [vmem:[#allocation31_spill] sm:$0xff] %v4379_v36  ;;  %v1334_v8 = vcombine.high %v4379_v36, %v4831_v0  ;;  %v2935_v43 = vrot.slane %v2921_v58, %v3666_v25 }
 0x1ba   : > { %v2889_v58 = vcombine.high %v4071_v3, %v4083_v50  ;;  %v4426_v36 = vrot.slane %v3379_v42, %v3565_v41 }
 0x1bb   : > { %v4365_v35 = vpop.permute.xlu1 %671  ;;  %v4367_v15 = vpop.permute.xlu0 %643  ;;  %v4392_v12 = vrot.slane %v1234_v29, %v3666_v25 }
 0x1bc   : > { %2647 = vrot.lane.b32.xlu0 %v2553_v33, %s3454_s7  ;;  %v1303_v33 = vcombine.high %v1278_v48, %v1294_v5  ;;  %v4404_v48 = vrot.slane %v2852_v38, %v3666_v25  ;;  %v3378_v5 = vld [vmem:[#allocation2 + $0xd] ss:$48 sps:$4 sm:$0xff]   ;;  %v2905_v38 = vcombine.high %v4069_v39, %v4081_v57  ;;  %v4437_v50 = vrot.slane %v2889_v58, %v3565_v41 }
 0x1bd   : > { %2651 = vrot.lane.b32.xlu1 %v2557_v59, %s3458_s11  ;;  %4862 = vst [vmem:[#allocation32_spill] sm:$0xff] %v4392_v12  ;;  %v2953_v39 = vcombine.high %v2935_v43, %v4831_v0 }
 0x1be   : > { %v1317_v16 = vrot.slane %v1303_v33, %v3666_v25  ;;  %4863 = vst [vmem:[#allocation33_spill] sm:$0xff] %v4404_v48  ;;  %v2884_v33 = vcombine.high %v4404_v48, %v4831_v0  ;;  %v4434_v57 = vrot.slane %v2905_v38, %v3565_v41  ;;  %v4867_v38 = vld [vmem:[#allocation10_spill] sm:$0xff] }
 0x1bf   : > { %v4381_v56 = vpop.permute.xlu1 %2039  ;;  %v4383_v49 = vpop.permute.xlu0 %2011 }
 0x1c0   : > { %1065 = vrot.lane.b32.xlu0 %v971_v22, %s3458_s11  ;;  %v1266_v22 = vcombine.high %v4392_v12, %v4831_v0  ;;  %v4416_v12 = vrot.slane %v3378_v5, %v3565_v41 }
 0x1c1   : > { %2985 = vrot.lane.b32.xlu1 %v2952_v52, %s3455_s8 }
 0x1c3   : > { %v4394_v59 = vpop.permute.xlu1 %679  ;;  %v4397_v17 = vpop.permute.xlu0 %651 }
 0x1c4   : > { %1367 = vrot.lane.b32.xlu0 %v1334_v8, %s3455_s8  ;;  %v1235_v8 = vcombine.high %v1210_v7, %v1226_v2  ;;  %v2853_v7 = vcombine.high %v2828_v44, %v2844_v27  ;;  %v3380_v27 = vld [vmem:[#allocation2 + $0x5] ss:$48 sps:$4 sm:$0xff]   ;;  %v3381_v44 = vld [vmem:[#allocation2 + $0x1d] ss:$48 sps:$4 sm:$0xff]  }
 0x1c5   : > { %1371 = vrot.lane.b32.xlu1 %v1317_v16, %s3452_s5 }
 0x1c6   : > { %v1249_v5 = vrot.slane %v1235_v8, %v3666_v25  ;;  %v2936_v8 = vcombine.low %v4437_v50, %v4434_v57 }
 0x1c7   : > { %v4406_v29 = vpop.permute.xlu1 %2047  ;;  %v4411_v52 = vpop.permute.xlu0 %2019 }
 0x1c8   : > { %1339 = vrot.lane.b32.xlu0 %v1266_v22, %s3455_s8  ;;  %v1335_v22 = vcombine.high %v1317_v16, %v4831_v0  ;;  %v1318_v16 = vcombine.low %v4416_v12, %v4426_v36  ;;  %v4868_v0 = vld [vmem:[#allocation11_spill] sm:$0xff] }
 0x1c9   : > { %2989 = vrot.lane.b32.xlu1 %v2935_v43, %s3452_s5 }
 0x1cb   : > { %v4422_v46 = vpop.permute.xlu1 %1073 }
 0x1cc   : > { %4864 = vst [vmem:[#allocation34_spill] sm:$0xff] %v4422_v46  ;;  %2957 = vrot.lane.b32.xlu0 %v2884_v33, %s3455_s8  ;;  %v2867_v33 = vrot.slane %v2853_v7, %v3666_v25  ;;  %v4458_v7 = vrot.slane %v3380_v27, %v3565_v41 }
 0x1cd   : > { %1375 = vrot.lane.b32.xlu1 %v1335_v22, %s3456_s9  ;;  %v1326_v22 = vrot.slane %v1318_v16, %v3666_v25  ;;  %v2821_v16 = vcombine.high %v4097_v62, %v4112_v30 }
 0x1ce   : > { %v4430_v2 = vpop.permute.xlu0 %1045 }
 0x1cf   : > { %4865 = vst [vmem:[#allocation35_spill] sm:$0xff] %v4430_v2  ;;  %v4439_v3 = vpop.permute.xlu1 %2659 }
 0x1d0   : > { %4866 = vst [vmem:[#allocation36_spill] sm:$0xff] %v4439_v3  ;;  %1343 = vrot.lane.b32.xlu0 %v1249_v5, %s3452_s5  ;;  %v4461_v3 = vrot.slane %v3381_v44, %v3565_v41  ;;  %v2944_v44 = vrot.slane %v2936_v8, %v3666_v25 }
 0x1d1   : > { %2993 = vrot.lane.b32.xlu1 %v2953_v39, %s3456_s9  ;;  %v4869_v39 = vmov 0.0  }
 0x1d2   : > { %v1698_v42 = vpop.permute.xlu0 %1697  ;;  %v1267_v2 = vcombine.high %v1249_v5, %v4869_v39  ;;  %v1250_v62 = vcombine.low %v4458_v7, %v4461_v3 }
 0x1d3   : > { %v1731_v58 = vsel %vm440_vm3, %v4867_v38, %v1698_v42  ;;  %v1670_v43 = vpop.permute.xlu1 %1669  ;;  %v2837_v42 = vcombine.high %v4095_v61, %v4110_v24  ;;  %v2835_v24 = vrot.slane %v2821_v16, %v3565_v41  ;;  %v2954_v16 = vcombine.high %v2944_v44, %v4869_v39 }
 0x1d4   : > { %v1724_v48 = vsel %vm440_vm3, %v4868_v0, %v1670_v43  ;;  %2961 = vrot.lane.b32.xlu0 %v2867_v33, %s3452_s5  ;;  %v1732_v0 = vsel %vm442_vm4, %v1731_v58, %v4313_v45  ;;  %v2885_v45 = vcombine.high %v2867_v33, %v4869_v39  ;;  %v1336_v58 = vcombine.high %v1326_v22, %v4869_v39  ;;  %s3382_s5 = scalar_lea.vmem %s4774_s27, 256 }
 0x1d5   : > { %1379 = vrot.lane.b32.xlu1 %v1326_v22, %s3453_s6  ;;  %v1725_v5 = vsel %vm442_vm4, %v1724_v48, %v4311_v40  ;;  %v4479_v61 = vrot.slane %v2837_v42, %v3565_v41  ;;  %v1319_v41 = vcombine.high %v4416_v12, %v4426_v36  ;;  %v3218_v36 = vld [vmem:[%s4815_s1 + $0x20] sm:$0xff]  ;;  %p3383_p11 = scmp.ne.s32.totalorder %s4774_s27, %s3382_s5 }
 0x1d6   : > { %v1706_v38 = vpop.permute.xlu0 %1705 }
 0x1d7   : > { %v1733_v43 = vsel %vm444_vm5, %v1732_v0, %v1706_v38  ;;  %v1678_v27 = vpop.permute.xlu1 %1677  ;;  %p3384_p12 = pnand %p3383_p11, %p3519_p5 }
 0x1d8   : > { %v1726_v46 = vsel %vm444_vm5, %v1725_v5, %v1678_v27  ;;  %1347 = vrot.lane.b32.xlu0 %v1267_v2, %s3456_s9  ;;  %v1734_v30 = vsel %vm446_vm6, %v1733_v43, %v4321_v26  ;;  %v2868_v26 = vcombine.low %v2835_v24, %v4479_v61  ;;  %v1333_v27 = vrot.slane %v1319_v41, %v3666_v25 }
 0x1d9   : > { %2997 = vrot.lane.b32.xlu1 %v2944_v44, %s3453_s6  ;;  %v1727_v2 = vsel %vm446_vm6, %v1726_v46, %v4319_v32  ;;  %v1258_v46 = vrot.slane %v1250_v62, %v3666_v25  ;;  %p3385_p13 = pneg %p3384_p12 }
 0x1da   : > { %v1714_v40 = vpop.permute.xlu0 %1713  ;;  %v2876_v43 = vrot.slane %v2868_v26, %v3666_v25  ;;  %v3459_v26 = vmov 0  }
 0x1db   : > { %v1735_v48 = vsel %vm448_vm7, %v1734_v30, %v1714_v40  ;;  %v1686_v8 = vpop.permute.xlu1 %1685  ;;  %v1268_v62 = vcombine.high %v1258_v46, %v4869_v39  ;;  %3353 = vset.pattern.permute.xlu0 %v3459_v26 }
 0x1dc   : > { %v1728_v0 = vsel %vm448_vm7, %v1727_v2, %v1686_v8  ;;  %2965 = vrot.lane.b32.xlu0 %v2885_v45, %s3456_s9  ;;  %v1736_v32 = vsel %vm450_vm8, %v1735_v48, %v4333_v13  ;;  %v1251_v45 = vcombine.high %v4458_v7, %v4461_v3  ;;  %v2869_v48 = vcombine.high %v2835_v24, %v4479_v61 }
 0x1dd   : > { %1383 = vrot.lane.b32.xlu1 %v1336_v58, %s3457_s10  ;;  %v1729_v38 = vsel %vm450_vm8, %v1728_v0, %v4331_v63  ;;  %v2937_v63 = vcombine.high %v4437_v50, %v4434_v57  ;;  %v2886_v50 = vcombine.high %v2876_v43, %v4869_v39  ;;  %v1337_v8 = vcombine.high %v1333_v27, %v4869_v39 }
 0x1de   : > { %v1722_v33 = vpop.permute.xlu0 %1721  ;;  %v1265_v41 = vrot.slane %v1251_v45, %v3666_v25  ;;  %v2883_v24 = vrot.slane %v2869_v48, %v3666_v25 }
 0x1df   : > { %v1694_v22 = vpop.permute.xlu1 %1693  ;;  %v1737_v42 = vsel %vm452_vm10, %v1736_v32, %v1722_v33  ;;  %v2951_v40 = vrot.slane %v2937_v63, %v3666_v25  ;;  %v4873_v63 = vld [vmem:[#allocation9_spill] sm:$0xff] }
 0x1e0   : > { %1351 = vrot.lane.b32.xlu0 %v1258_v46, %s3453_s6  ;;  %3219 = vmatprep.subr.msk.mxu0 %vm706_vm9, %v1737_v42  ;;  %v1730_v12 = vsel %vm452_vm10, %v1729_v38, %v1694_v22  ;;  %v4870_v46 = vld [vmem:[#allocation6_spill] sm:$0xff] }
 0x1e1   : > { %3001 = vrot.lane.b32.xlu1 %v2954_v16, %s3457_s10  ;;  %3220 = vmatpush1.msk.msra.mxu0 %vm706_vm9, %v1730_v12  ;;  %v2955_v61 = vcombine.high %v2951_v40, %v4869_v39  ;;  %v454_v32 = vsel %vm440_vm3, %v4870_v46, %v4173_v54  ;;  %v2887_v16 = vcombine.high %v2883_v24, %v4869_v39 }
 0x1e2   : > { %v660_v13 = vpop.permute.xlu0 %659  ;;  %3221 = vmatmul.mubr.msk.f32.vlgmr.msra.gmra.mrb[0].mxu0 %vm702_vm11, %v3218_v36 }
 0x1e3   : > { %v2028_v5 = vpop.permute.xlu1 %2027  ;;  %2143 = vmatprep.mubr.f32.mxu0 %v4869_v39  ;;  %v693_v58 = vsel %vm440_vm3, %v4106_v11, %v660_v13  ;;  %v4872_v13 = vld [vmem:[#allocation8_spill] sm:$0xff] }
 0x1e4   : > { %2969 = vrot.lane.b32.xlu0 %v2876_v43, %s3453_s6  ;;  %v694_v3 = vsel %vm442_vm4, %v693_v58, %v4341_v21  ;;  %v2061_v11 = vsel %vm440_vm3, %v4115_v31, %v2028_v5  ;;  %v2352_v5 = vsel %vm440_vm3, %v4873_v63, %v4201_v10  ;;  %s3386_s6 = sshll.u32 %s3460_s16, 4  ;;  %s3387_s6 = int_to_ptr.vmem [resolvable:$false] %s3386_s6 }
 0x1e5   : > { %1387 = vrot.lane.b32.xlu1 %v1333_v27, %s3454_s7  ;;  %v2062_v25 = vsel %vm442_vm4, %v2061_v11, %v4351_v53  ;;  %v455_v53 = vsel %vm442_vm4, %v454_v32, %v4126_v18  ;;  %v3203_v32 = vld [vmem:[%s4815_s1 + $0x8] sm:$0xff]  ;;  %p3389_p0 = scmp.lt.s32.totalorder %s4774_s27, %s3387_s6 }
 0x1e6   : > { %v632_v44 = vpop.permute.xlu0 %631  ;;  %v456_v43 = vsel %vm444_vm5, %v455_v53, %v4199_v20 }
 0x1e7   : > { %v668_v30 = vpop.permute.xlu1 %667  ;;  %v686_v21 = vsel %vm440_vm3, %v4124_v23, %v632_v44  ;;  %v4871_v23 = vld [vmem:[#allocation7_spill] sm:$0xff] }
 0x1e8   : > { %1355 = vrot.lane.b32.xlu0 %v1268_v62, %s3457_s10  ;;  %v695_v33 = vsel %vm444_vm5, %v694_v3, %v668_v30  ;;  %v2359_v12 = vsel %vm440_vm3, %v4871_v23, %v4181_v47  ;;  %v687_v47 = vsel %vm442_vm4, %v686_v21, %v4343_v34  ;;  %v4877_v3 = vld [vmem:[#allocation20_spill] sm:$0xff] }
 0x1e9   : > { %3005 = vrot.lane.b32.xlu1 %v2951_v40, %s3454_s7  ;;  %v696_v31 = vsel %vm446_vm6, %v695_v33, %v4365_v35  ;;  %v1269_v35 = vcombine.high %v1265_v41, %v4869_v39  ;;  %v2360_v40 = vsel %vm442_vm4, %v2359_v12, %v4141_v6  ;;  %v2353_v6 = vsel %vm442_vm4, %v2352_v5, %v4143_v4  ;;  %v4884_v12 = vld [vmem:[#allocation26_spill] sm:$0xff]  ;;  %v4887_v5 = vld [vmem:[#allocation28_spill] sm:$0xff] }
 0x1ea   : > { %v2000_v57 = vpop.permute.xlu0 %1999 }
 0x1eb   : > { %v2036_v2 = vpop.permute.xlu1 %2035  ;;  %v2054_v38 = vsel %vm440_vm3, %v4137_v51, %v2000_v57  ;;  %v441_v51 = vsel %vm440_vm3, %v4872_v13, %v4183_v1  ;;  %v2361_v57 = vsel %vm444_vm5, %v2360_v40, %v4216_v60 }
 0x1ec   : > { %2973 = vrot.lane.b32.xlu0 %v2886_v50, %s3457_s10  ;;  %v2063_v36 = vsel %vm444_vm5, %v2062_v25, %v2036_v2  ;;  %v2055_v44 = vsel %vm442_vm4, %v2054_v38, %v4353_v28  ;;  %v443_v28 = vsel %vm442_vm4, %v441_v51, %v4128_v55  ;;  %v4882_v38 = vld [vmem:[#allocation23_spill] sm:$0xff]  ;;  %v4886_v51 = vld [vmem:[#allocation29_spill] sm:$0xff] }
 0x1ed   : > { %1391 = vrot.lane.b32.xlu1 %v1337_v8, %s3458_s11  ;;  %v2064_v62 = vsel %vm446_vm6, %v2063_v36, %v4381_v56  ;;  %v457_v56 = vsel %vm446_vm6, %v456_v43, %v4151_v14  ;;  %v445_v50 = vsel %vm444_vm5, %v443_v28, %v4218_v19  ;;  %v2354_v14 = vsel %vm444_vm5, %v2353_v6, %v4236_v9  ;;  %v4874_v9 = vld [vmem:[#allocation13_spill] sm:$0xff] }
 0x1ee   : > { %v640_v0 = vpop.permute.xlu0 %639  ;;  %v458_v19 = vsel %vm448_vm7, %v457_v56, %v4234_v37  ;;  %v2362_v58 = vsel %vm446_vm6, %v2361_v57, %v4874_v9 }
 0x1ef   : > { %v676_v7 = vpop.permute.xlu1 %675  ;;  %v688_v18 = vsel %vm444_vm5, %v687_v47, %v640_v0  ;;  %v4875_v0 = vld [vmem:[#allocation12_spill] sm:$0xff] }
 0x1f0   : > { %1359 = vrot.lane.b32.xlu0 %v1265_v41, %s3454_s7  ;;  %v697_v54 = vsel %vm448_vm7, %v696_v31, %v676_v7  ;;  %v689_v55 = vsel %vm446_vm6, %v688_v18, %v4367_v15  ;;  %v4876_v41 = vld [vmem:[#allocation14_spill] sm:$0xff]  ;;  %v2363_v7 = vsel %vm448_vm7, %v2362_v58, %v4877_v3  ;;  %v4881_v31 = vld [vmem:[#allocation24_spill] sm:$0xff] }
 0x1f1   : > { %3009 = vrot.lane.b32.xlu1 %v2955_v61, %s3458_s11  ;;  %v698_v20 = vsel %vm450_vm8, %v697_v54, %v4394_v59  ;;  %v3110_v59 = vld [vmem:[%s4816_s2] sm:$0xff]  ;;  %v4878_v61 = vld [vmem:[#allocation15_spill] sm:$0xff]  ;;  %v4883_v54 = vld [vmem:[#allocation25_spill] sm:$0xff] }
 0x1f2   : > { %v2008_v22 = vpop.permute.xlu0 %2007 }
 0x1f3   : > { %v2044_v42 = vpop.permute.xlu1 %2043  ;;  %v2056_v30 = vsel %vm444_vm5, %v2055_v44, %v2008_v22  ;;  %v4879_v22 = vld [vmem:[#allocation21_spill] sm:$0xff] }
 0x1f4   : > { %2977 = vrot.lane.b32.xlu0 %v2883_v24, %s3454_s7  ;;  %v2065_v10 = vsel %vm448_vm7, %v2064_v62, %v2044_v42  ;;  %v2057_v2 = vsel %vm446_vm6, %v2056_v30, %v4383_v49  ;;  %v447_v49 = vsel %vm446_vm6, %v445_v50, %v4875_v0  ;;  %v459_v24 = vsel %vm450_vm8, %v458_v19, %v4878_v61  ;;  %v461_v62 = vld [vmem:[%s4815_s1] sm:$0xff]  ;;  %v4890_v19 = vld [vmem:[#allocation17_spill] sm:$0xff]  ;;  %v4892_v61 = vld [vmem:[#allocation19_spill] sm:$0xff]  ;;  %s3388_s7 = scalar_lea.vmem %s3387_s6, 512 }
 0x1f5   : > { %2981 = vrot.lane.b32.xlu1 %v2887_v16, %s3458_s11  ;;  %v2066_v60 = vsel %vm450_vm8, %v2065_v10, %v4406_v29  ;;  %v2355_v29 = vsel %vm446_vm6, %v2354_v14, %v4876_v41  ;;  %v449_v21 = vsel %vm448_vm7, %v447_v49, %v4879_v22  ;;  %v460_v42 = vsel %vm452_vm10, %v459_v24, %v4881_v31  ;;  %v4891_v49 = vld [vmem:[#allocation36_spill] sm:$0xff]  ;;  %p3390_p1 = scmp.lt.s32.totalorder %s3388_s7, %s3382_s5 }
 0x1f6   : > { %v648_v27 = vpop.permute.xlu0 %647  ;;  %v2356_v36 = vsel %vm448_vm7, %v2355_v29, %v4882_v38  ;;  %v451_v23 = vsel %vm450_vm8, %v449_v21, %v4883_v54 }
 0x1f7   : > { %v684_v1 = vpop.permute.xlu1 %683  ;;  %v690_v48 = vsel %vm448_vm7, %v689_v55, %v648_v27  ;;  %v453_v43 = vsel %vm452_vm10, %v451_v23, %v4886_v51  ;;  %p3391_p2 = por %p3390_p1, %p3389_p0 }
 0x1f8   : > { %1363 = vrot.lane.b32.xlu0 %v1269_v35, %s3458_s11  ;;  %v699_v34 = vsel %vm452_vm10, %v698_v20, %v684_v1  ;;  %v691_v37 = vsel %vm450_vm8, %v690_v48, %v4397_v17  ;;  %v4880_v17 = vld [vmem:[#allocation22_spill] sm:$0xff]  ;;  %v4885_v35 = vld [vmem:[#allocation27_spill] sm:$0xff]  ;;  %v3226_v1 = vld [vmem:[%s4815_s1 + $0x30] sm:$0xff] }
 0x1f9   : > { %3204 = vmatprep.subr.msk.mxu1 %vm706_vm9, %v699_v34  ;;  %v2364_v25 = vsel %vm450_vm8, %v2363_v7, %v4880_v17  ;;  %v2357_v13 = vsel %vm450_vm8, %v2356_v36, %v4885_v35  ;;  %p3392_p3 = pnand %p3391_p2, %p3385_p13 }
 0x1fa   : > { %v2016_v45 = vpop.permute.xlu0 %2015  ;;  %v2365_v53 = vsel %vm452_vm10, %v2364_v25, %v4884_v12  ;;  %v2358_v47 = vsel %vm452_vm10, %v2357_v13, %v4887_v5  ;;  %v3210_v5 = vld [vmem:[%s4815_s1 + $0x10] sm:$0xff] }
 0x1fb   : > { %v2052_v8 = vpop.permute.xlu1 %2051  ;;  %v2058_v4 = vsel %vm448_vm7, %v2057_v2, %v2016_v45  ;;  %v4888_v45 = vld [vmem:[#allocation16_spill] sm:$0xff]  ;;  %v4889_v2 = vld [vmem:[#allocation34_spill] sm:$0xff] }
 0x1fc   : > { %v2067_v15 = vsel %vm452_vm10, %v2066_v60, %v2052_v8  ;;  %3113 = vperm.xlu0 %3353, %v3110_v59   ;;  %v2059_v33 = vsel %vm450_vm8, %v2058_v4, %v4411_v52  ;;  %v3222_v52 = vld [vmem:[%s4815_s1 + $0x28] sm:$0xff] }
 0x1fd   : > { %3223 = vmatprep.subr.msk.mxu0 %vm706_vm9, %v2067_v15 }
 0x1fe   : > { %v656_v26 = vpop.permute.xlu0 %655 }
 0x1ff   : > { %v2024_v11 = vpop.permute.xlu1 %2023  ;;  %v692_v46 = vsel %vm452_vm10, %v691_v37, %v656_v26 }
 0x200   : > { %v2060_v16 = vsel %vm452_vm10, %v2059_v33, %v2024_v11  ;;  %3205 = vmatpush1.msk.msra.mxu1 %vm706_vm9, %v692_v46  ;;  %v4893_v46 = vld [vmem:[#allocation18_spill] sm:$0xff] }
 0x201   : > { %3207 = vmatprep.subr.msk.mxu1 %vm706_vm9, %v460_v42  ;;  %3224 = vmatpush1.msk.msra.mxu0 %vm706_vm9, %v2060_v16  ;;  %v4894_v16 = vld [vmem:[#allocation35_spill] sm:$0xff] }
 0x202   : > { %3206 = vmatmul.mubr.msk.f32.vlgmr.msra.gmra.mrb[0].mxu1 %vm702_vm11, %v3203_v32  ;;  %3227 = vmatprep.subr.msk.mxu0 %vm706_vm9, %v2365_v53  ;;  %v1070_v63 = vpop.permute.xlu0 %1069  ;;  %v3230_v53 = vld [vmem:[%s4815_s1 + $0x38] sm:$0xff] }
 0x203   : > { %3208 = vmatpush1.msk.msra.mxu1 %vm706_vm9, %v453_v43  ;;  %v2656_v27 = vpop.permute.xlu1 %2655  ;;  %3225 = vmatmul.mubr.msk.f32.vlgmr.msra.gmra.mrb[0].mxu0 %vm702_vm11, %v3222_v52  ;;  %v1103_v14 = vsel %vm440_vm3, %v4888_v45, %v1070_v63 }
 0x204   : > { %3228 = vmatpush1.msk.msra.mxu0 %vm706_vm9, %v2358_v47  ;;  %2441 = vmatprep.mubr.f32.mxu0 %v4869_v39  ;;  %v1104_v60 = vsel %vm442_vm4, %v1103_v14, %v4889_v2  ;;  %v2689_v4 = vsel %vm440_vm3, %v4890_v19, %v2656_v27 }
 0x205   : > { %857 = vmatprep.mubr.f32.mxu1 %v4869_v39  ;;  %v2690_v41 = vsel %vm442_vm4, %v2689_v4, %v4891_v49 }
 0x206   : > { %v1042_v18 = vpop.permute.xlu0 %1041 }
 0x207   : > { %v1078_v44 = vpop.permute.xlu1 %1077  ;;  %v1096_v32 = vsel %vm440_vm3, %v4893_v46, %v1042_v18 }
 0x208   : > { %v1105_v15 = vsel %vm444_vm5, %v1104_v60, %v1078_v44  ;;  %v1097_v52 = vsel %vm442_vm4, %v1096_v32, %v4894_v16 }
 0x20a   : > { %v2628_v20 = vpop.permute.xlu0 %2627  ;;  %3209 = vmatmul.mubr.msk.f32.vlgmr.msra.gmra.mrb[0].mxu1 %vm702_vm11, %v461_v62 }
 0x20b   : > { %v2664_v30 = vpop.permute.xlu1 %2663  ;;  %3229 = vmatmul.mubr.msk.f32.vlgmr.msra.gmra.mrb[0].mxu0 %vm702_vm11, %v3226_v1  ;;  %1185 = vmatprep.mubr.f32.mxu1 %v4869_v39  ;;  %v2682_v24 = vsel %vm440_vm3, %v4892_v61, %v2628_v20 }
 0x20c   : > { %2771 = vmatprep.mubr.f32.mxu0 %v4869_v39  ;;  %v2691_v37 = vsel %vm444_vm5, %v2690_v41, %v2664_v30 }
 0x20e   : > { %v2632_v10 = vpop.permute.xlu0 %2631 }
 0x20f   : > { %v1082_v34 = vpop.permute.xlu1 %1081  ;;  %v2683_v22 = vsel %vm442_vm4, %v2682_v24, %v2632_v10 }
 0x210   : > { %v1106_v9 = vsel %vm446_vm6, %v1105_v15, %v1082_v34  ;;  %v4896_v15 = vld [vmem:[#allocation30_spill] sm:$0xff] }
 0x212   : > { %v1050_v40 = vpop.permute.xlu0 %1049 }
 0x213   : > { %v2668_v28 = vpop.permute.xlu1 %2667  ;;  %v1098_v54 = vsel %vm444_vm5, %v1097_v52, %v1050_v40 }
 0x214   : > { %v2692_v7 = vsel %vm446_vm6, %v2691_v37, %v2668_v28 }
 0x216   : > { %v2636_v56 = vpop.permute.xlu0 %2635 }
 0x217   : > { %v1086_v59 = vpop.permute.xlu1 %1085  ;;  %v2684_v25 = vsel %vm444_vm5, %v2683_v22, %v2636_v56 }
 0x218   : > { %v1107_v58 = vsel %vm448_vm7, %v1106_v9, %v1086_v59 }
 0x21a   : > { %v1054_v57 = vpop.permute.xlu0 %1053 }
 0x21b   : > { %v2672_v50 = vpop.permute.xlu1 %2671  ;;  %v1099_v35 = vsel %vm446_vm6, %v1098_v54, %v1054_v57 }
 0x21c   : > { %v2693_v11 = vsel %vm448_vm7, %v2692_v7, %v2672_v50  ;;  %v4897_v7 = vld [vmem:[#allocation33_spill] sm:$0xff] }
 0x21e   : > { %v2640_v6 = vpop.permute.xlu0 %2639 }
 0x21f   : > { %v1090_v55 = vpop.permute.xlu1 %1089  ;;  %v2685_v42 = vsel %vm446_vm6, %v2684_v25, %v2640_v6 }
 0x220   : > { %v1108_v29 = vsel %vm450_vm8, %v1107_v58, %v1090_v55 }
 0x222   : > { %v1058_v48 = vpop.permute.xlu0 %1057 }
 0x223   : > { %v2676_v8 = vpop.permute.xlu1 %2675  ;;  %v1100_v51 = vsel %vm448_vm7, %v1099_v35, %v1058_v48  ;;  %v4895_v48 = vld [vmem:[#allocation31_spill] sm:$0xff] }
 0x224   : > { %v2694_v21 = vsel %vm450_vm8, %v2693_v11, %v2676_v8 }
 0x226   : > { %v2644_v0 = vpop.permute.xlu0 %2643 }
 0x227   : > { %v1094_v26 = vpop.permute.xlu1 %1093  ;;  %v2686_v38 = vsel %vm448_vm7, %v2685_v42, %v2644_v0 }
 0x228   : > { %v1109_v3 = vsel %vm452_vm10, %v1108_v29, %v1094_v26 }
 0x229   : > { %3211 = vmatprep.subr.msk.mxu1 %vm706_vm9, %v1109_v3 }
 0x22a   : > { %v1062_v33 = vpop.permute.xlu0 %1061 }
 0x22b   : > { %v2680_v17 = vpop.permute.xlu1 %2679  ;;  %v1101_v43 = vsel %vm450_vm8, %v1100_v51, %v1062_v33 }
 0x22c   : > { %v2695_v31 = vsel %vm452_vm10, %v2694_v21, %v2680_v17  ;;  %v4898_v17 = vld [vmem:[#allocation32_spill] sm:$0xff] }
 0x22d   : > { %3231 = vmatprep.subr.msk.mxu0 %vm706_vm9, %v2695_v31 }
 0x22e   : > { %v2648_v36 = vpop.permute.xlu0 %2647 }
 0x22f   : > { %v2687_v23 = vsel %vm450_vm8, %v2686_v38, %v2648_v36  ;;  %v2652_v12 = vpop.permute.xlu1 %2651 }
 0x230   : > { %v2688_v13 = vsel %vm452_vm10, %v2687_v23, %v2652_v12  ;;  %v3234_v23 = vld [vmem:[%s4815_s1 + $0x40] sm:$0xff] }
 0x231   : > { %3232 = vmatpush1.msk.msra.mxu0 %vm706_vm9, %v2688_v13 }
 0x232   : > { %v1066_v63 = vpop.permute.xlu0 %1065  ;;  %3233 = vmatmul.mubr.msk.f32.vlgmr.msra.gmra.mrb[0].mxu0 %vm702_vm11, %v3230_v53 }
 0x233   : > { %v1102_v47 = vsel %vm452_vm10, %v1101_v43, %v1066_v63  ;;  %v2986_v27 = vpop.permute.xlu1 %2985  ;;  %3101 = vmatprep.mubr.f32.mxu0 %v4869_v39  ;;  %v3214_v43 = vld [vmem:[%s4815_s1 + $0x18] sm:$0xff] }
 0x234   : > { %3212 = vmatpush1.msk.msra.mxu1 %vm706_vm9, %v1102_v47  ;;  %v3019_v9 = vsel %vm440_vm3, %v4896_v15, %v2986_v27 }
 0x235   : > { %3213 = vmatmul.mubr.msk.f32.vlgmr.msra.gmra.mrb[0].mxu1 %vm702_vm11, %v3210_v5 }
 0x236   : > { %v1368_v18 = vpop.permute.xlu0 %1367  ;;  %1483 = vmatprep.mubr.f32.mxu1 %v4869_v39 }
 0x237   : > { %v1372_v44 = vpop.permute.xlu1 %1371  ;;  %v1401_v39 = vsel %vm440_vm3, %v4895_v48, %v1368_v18 }
 0x238   : > { %v1402_v60 = vsel %vm442_vm4, %v1401_v39, %v1372_v44 }
 0x23a   : > { %v1340_v62 = vpop.permute.xlu0 %1339 }
 0x23b   : > { %v2990_v1 = vpop.permute.xlu1 %2989  ;;  %v1394_v25 = vsel %vm440_vm3, %v4898_v17, %v1340_v62 }
 0x23c   : > { %v3020_v49 = vsel %vm442_vm4, %v3019_v9, %v2990_v1 }
 0x23e   : > { %v2958_v20 = vpop.permute.xlu0 %2957 }
 0x23f   : > { %v1376_v30 = vpop.permute.xlu1 %1375  ;;  %v3012_v61 = vsel %vm440_vm3, %v4897_v7, %v2958_v20 }
 0x240   : > { %v1403_v19 = vsel %vm444_vm5, %v1402_v60, %v1376_v30 }
 0x242   : > { %v1344_v10 = vpop.permute.xlu0 %1343 }
 0x243   : > { %v2994_v34 = vpop.permute.xlu1 %2993  ;;  %v1395_v42 = vsel %vm442_vm4, %v1394_v25, %v1344_v10 }
 0x244   : > { %v3021_v26 = vsel %vm444_vm5, %v3020_v49, %v2994_v34 }
 0x246   : > { %v2962_v40 = vpop.permute.xlu0 %2961 }
 0x247   : > { %v1380_v28 = vpop.permute.xlu1 %1379  ;;  %v3013_v33 = vsel %vm442_vm4, %v3012_v61, %v2962_v40 }
 0x248   : > { %v1404_v4 = vsel %vm446_vm6, %v1403_v19, %v1380_v28 }
 0x24a   : > { %v1348_v56 = vpop.permute.xlu0 %1347 }
 0x24b   : > { %v2998_v59 = vpop.permute.xlu1 %2997  ;;  %v1396_v38 = vsel %vm444_vm5, %v1395_v42, %v1348_v56 }
 0x24c   : > { %v3022_v3 = vsel %vm446_vm6, %v3021_v26, %v2998_v59 }
 0x24e   : > { %v2966_v57 = vpop.permute.xlu0 %2965 }
 0x24f   : > { %v1384_v50 = vpop.permute.xlu1 %1383  ;;  %v3014_v22 = vsel %vm444_vm5, %v3013_v33, %v2966_v57 }
 0x250   : > { %v1405_v58 = vsel %vm448_vm7, %v1404_v4, %v1384_v50 }
 0x252   : > { %v1352_v6 = vpop.permute.xlu0 %1351 }
 0x253   : > { %v3002_v55 = vpop.permute.xlu1 %3001  ;;  %v1397_v12 = vsel %vm446_vm6, %v1396_v38, %v1352_v6 }
 0x254   : > { %v3023_v24 = vsel %vm448_vm7, %v3022_v3, %v3002_v55 }
 0x256   : > { %v2970_v45 = vpop.permute.xlu0 %2969 }
 0x257   : > { %v1388_v14 = vpop.permute.xlu1 %1387  ;;  %v3015_v31 = vsel %vm446_vm6, %v3014_v22, %v2970_v45 }
 0x258   : > { %v1406_v41 = vsel %vm450_vm8, %v1405_v58, %v1388_v14 }
 0x25a   : > { %v1356_v2 = vpop.permute.xlu0 %1355 }
 0x25b   : > { %v3006_v8 = vpop.permute.xlu1 %3005  ;;  %v1398_v35 = vsel %vm448_vm7, %v1397_v12, %v1356_v2 }
 0x25c   : > { %v3024_v46 = vsel %vm450_vm8, %v3023_v24, %v3006_v8 }
 0x25e   : > { %v2974_v0 = vpop.permute.xlu0 %2973 }
 0x25f   : > { %v1392_v29 = vpop.permute.xlu1 %1391  ;;  %v3016_v16 = vsel %vm448_vm7, %v3015_v31, %v2974_v0 }
 0x260   : > { %v1407_v37 = vsel %vm452_vm10, %v1406_v41, %v1392_v29 }
 0x261   : > { %3215 = vmatprep.subr.msk.mxu1 %vm706_vm9, %v1407_v37 }
 0x262   : > { %v1360_v11 = vpop.permute.xlu0 %1359 }
 0x263   : > { %v3010_v32 = vpop.permute.xlu1 %3009  ;;  %v1399_v13 = vsel %vm450_vm8, %v1398_v35, %v1360_v11 }
 0x264   : > { %v3025_v21 = vsel %vm452_vm10, %v3024_v46, %v3010_v32 }
 0x265   : > { %3235 = vmatprep.subr.msk.mxu0 %vm706_vm9, %v3025_v21 }
 0x266   : > { %v2978_v52 = vpop.permute.xlu0 %2977 }
 0x267   : > { %v3017_v36 = vsel %vm450_vm8, %v3016_v16, %v2978_v52  ;;  %v2982_v54 = vpop.permute.xlu1 %2981 }
 0x268   : > { %v3018_v53 = vsel %vm452_vm10, %v3017_v36, %v2982_v54 }
 0x269   : > { %3236 = vmatpush1.msk.msra.mxu0 %vm706_vm9, %v3018_v53 }
 0x26a   : > { %3237 = vmatmul.mubr.msk.f32.vlgmr.msra.gmra.mrb[0].mxu0 %vm702_vm11, %v3234_v23  ;;  %v1364_v51 = vpop.permute.xlu0 %1363 }
 0x26b   : > { %v1400_v63 = vsel %vm452_vm10, %v1399_v13, %v1364_v51 }
 0x26c   : > { %3216 = vmatpush1.msk.msra.mxu1 %vm706_vm9, %v1400_v63 }
 0x26d   : > { %3217 = vmatmul.mubr.msk.f32.vlgmr.msra.gmra.mrb[0].mxu1 %vm702_vm11, %v3214_v43 }
 0x27b   : > { %v3114_v18 = vpop.permute.xlu0 %3113 }
 0x33d   : > { %v3103_v5 = vpop.f32.mrb[0].mxu0 }
 0x33e   : > { %v3105_v47 = vpop.f32.mrb[1].mxu0 }
 0x340   : > { %v1485_v27 = vpop.f32.mrb[0].mxu1 }
 0x341   : > { %v3264_v44 = vadd.f32 %v3103_v5, %v1485_v27  ;;  %v1487_v62 = vpop.f32.mrb[1].mxu1 }
 0x342   : > { %v3265_v1 = vadd.f32 %v3105_v47, %v1487_v62 }
 0x343   : > { %v3116_v20 = vadd.f32 %v3264_v44, %v3114_v18 }
 0x344   : > { %v3117_v30 = vadd.f32 %v3265_v1, %v3114_v18 }
 0x345   : > { %v3118_v10 = vmax.f32 %v3116_v20, 0.0 }
 0x346   : > { %v3119_v34 = vmax.f32 %v3117_v30, 0.0 }
 0x347   : > { %3120 = vst [vmem:[%s163_s26] sm:$0xff] %v3118_v10 }
 0x348   : > { %3121 = vst [vmem:[%s163_s26 + $0x8] sm:$0xff] %v3119_v34 }
 0x349   : > { %3395 = shalt.err (!%p3392_p3)
}
 0x34a   : > { %s3396_s8 = scalar_lea.hbm %s4772_s30, 256  ;;  %s3400_s11 = scalar_lea.hbm %s4817_s3, 512 }
 0x34b   : > { %p3397_p4 = scmp.ne.s32.totalorder %s4772_s30, %s3396_s8  ;;  %p3401_p9 = scmp.lt.u32.totalorder %s4772_s30, %s4817_s3 }
 0x34c   : > { %p3402_p10 = scmp.lt.u32.totalorder %s3400_s11, %s3396_s8  ;;  %p3404_p12 = scmp.lt.u32.totalorder %s3396_s8, %s4772_s30 }
 0x34d   : > { %p3398_p7 = pnand %p3397_p4, %p3519_p5 }
 0x34e   : > { %p3403_p11 = por %p3402_p10, %p3401_p9 }
 0x34f   : > { %p3399_p8 = pneg %p3398_p7 }
 0x350   : > { %p3405_p13 = por %p3404_p12, %p3403_p11 }
 0x352   : > { %p3406_p0 = pnand %p3405_p13, %p3399_p8 }
 0x354   : > { %3409 = shalt.err (!%p3406_p0)
}
 0x355   : > { %3280 = dma.vmem_to_hbm [thread:$0]  (%p3519_p5), %s4774_s27, 256, %s4772_s30, %s3123_s4  }
 0x356 PF: > { %p3286_p1 = scmp.ge.s32.totalorder %s3444_s15, 2  ;;  %s3149_s20 = sand.u32 1, %s3432_s12  }
 0x357   : > { %s3150_s24 = scalar_lea.sflag [#allocation4], %s3149_s20 }
 0x358   : > { %p3283_p2 = pnand %p3286_p1, %p3523_p6 }
 0x35a   : > { %3427 = dma.done.wait (!%p3283_p2), %s3150_s24, 256  }
 0x35b   : > { %3429 = vsyncadd (!%p3283_p2), %s3150_s24, 4294967040  ;;  %p13_p3 = scmp.ge.s32.totalorder %s3506_s18, 4   ;;  %s4899_s12 = smov %s3436_s13 }
 0x35c   : > { %s4900_s13 = smov %s3440_s14  ;;  %s4901_s14 = smov %s3517_s21 }
 0x35d   : > { %s4902_s15 = smov %s3506_s18  ;;  %15 = sbr.rel (!%p13_p3) target bundleno = 3 (0x3), region = 75 }
 0x364   :  { %3155 = vsyncpa [#allocation4], 1 }
 0x365   :  { %3157 = vsyncpa [#allocation4 + $0x1], 1 }

</bundles_post_ra>
